<compile_context>
chip_gen: v5e
topology: v5e:2x2
jax: 0.10.0
libtpu: 0.0.40
codegen_flags: <defaults>
</compile_context>

<pallas_src>
import jax
import jax.numpy as jnp
from jax import lax
from jax.experimental import pallas as pl
from jax.experimental.pallas import tpu as pltpu

BN_EPS = 1e-5


def _make_kpenc_kernel(couts, P, Ppad, emit_intermediates):
    """couts: output channels of the convs; P = B*N (valid lanes), Ppad padded."""
    inv_p = 1.0 / float(P)
    n_layers = len(couts)
    needs_mask = (Ppad != P)

    def kernel(*refs):
        x_ref = refs[0]
        w_refs = refs[1:1 + n_layers]
        p_ref = refs[1 + n_layers]
        out_refs = refs[2 + n_layers:]

        def pcol(j, C):
            # per-channel parameter column j, as a (C, 1) sublane vector
            return p_ref[0:C, j:j + 1]

        if needs_mask:
            # hoisted once; zeroes padded lanes before BN statistics
            lane = lax.broadcasted_iota(jnp.int32, (1, Ppad), 1)
            mask = (lane < P).astype(jnp.float32)

        a = x_ref[...]                                   # (Cin_pad, Ppad)
        oi = 0
        for li in range(n_layers - 1):
            C = couts[li]
            # conv1x1 == per-position channel matmul on the MXU
            c = jnp.dot(w_refs[li][...], a, preferred_element_type=jnp.float32)
            if emit_intermediates:
                c = c + pcol(li, C)      # conv bias (cancelled by BN otherwise)
                out_refs[oi][...] = c
                oi += 1
            # training-mode BN: single-pass batch stats over the (B*N) lane
            # axis, folded into a per-channel scale/shift.
            cm = c * mask if needs_mask else c
            mean = jnp.sum(cm, axis=1, keepdims=True) * inv_p
            ex2 = jnp.sum(cm * cm, axis=1, keepdims=True) * inv_p
            var = ex2 - mean * mean
            scale = pcol(n_layers + li, C) * lax.rsqrt(var + BN_EPS)
            shift = pcol(2 * n_layers - 1 + li, C) - scale * mean
            n = scale * c + shift
            if emit_intermediates:
                out_refs[oi][...] = n
                oi += 1
            a = jnp.maximum(n, 0.0)                      # ReLU
            if emit_intermediates:
                out_refs[oi][...] = a
                oi += 1
        # final conv (bias kept; it is constant-initialised to 0 in the module)
        li = n_layers - 1
        out_refs[oi][...] = (
            jnp.dot(w_refs[li][...], a, preferred_element_type=jnp.float32)
            + pcol(li, couts[li]))

    return kernel


def keypoint_encoder(x, params, return_intermediates=True):
    """x: (B, 3, N) f32; params: list of 5 dicts (w, b, [gamma, beta]).

    Returns the same tuple as the PyTorch forward():
      (conv1, bn1, relu1, ..., conv4, bn4, relu4, conv5), each (B, C_i, N),
    or just (conv5,) when return_intermediates=False.
    """
    B, cin, N = x.shape
    P = B * N
    Ppad = ((P + 127) // 128) * 128              # lane-dense, unmasked stores
    n_layers = len(params)
    couts = [p['w'].shape[0] for p in params]
    cmax = max(couts)
    cin_pad = 8                                  # sublane-align the 3 input channels

    # ---------- layout plumbing (outside the kernel) ----------
    # lane-dense activation slab: (Cin_pad, Ppad)
    x_slab = jnp.transpose(x, (1, 0, 2)).reshape(cin, P)
    x_slab = jnp.pad(x_slab, ((0, cin_pad - cin), (0, Ppad - P)))
    ws = [jnp.pad(params[0]['w'], ((0, 0), (0, cin_pad - cin)))]
    ws += [params[i]['w'] for i in range(1, n_layers)]

    # pack all per-channel params into one (Cmax, 3*n_layers - 2) slab:
    #   cols [0, n)        : conv biases b1..b5
    #   cols [n, 2n-1)     : BN gammas  g1..g4
    #   cols [2n-1, 3n-2)  : BN betas   be1..be4
    def col(v, C):
        return jnp.pad(jnp.reshape(v, (-1,)), (0, cmax - C))
    cols = [col(params[i]['b'], couts[i]) for i in range(n_layers)]
    cols += [col(params[i]['gamma'], couts[i]) for i in range(n_layers - 1)]
    cols += [col(params[i]['beta'], couts[i]) for i in range(n_layers - 1)]
    pslab = jnp.stack(cols, axis=1)              # (Cmax, 13)

    out_shapes = []
    if return_intermediates:
        for i in range(n_layers - 1):
            out_shapes += [jax.ShapeDtypeStruct((couts[i], Ppad), jnp.float32)] * 3
    out_shapes += [jax.ShapeDtypeStruct((couts[-1], Ppad), jnp.float32)]

    vmem = pl.BlockSpec(memory_space=pltpu.MemorySpace.VMEM)
    fn = pl.pallas_call(
        _make_kpenc_kernel(couts, P, Ppad, return_intermediates),
        out_shape=tuple(out_shapes),
        in_specs=[vmem] * (2 + n_layers),
        out_specs=tuple([vmem] * len(out_shapes)),
    )
    # TODO(synk): for very large B*N (activations no longer VMEM-resident) add
    # a grid over the lane axis with two-pass BN statistics (partial sum/sumsq
    # per tile, then apply) instead of this single-shot whole-array call.
    outs = fn(x_slab, *ws, pslab)
    if not isinstance(outs, (list, tuple)):
        outs = (outs,)
    # drop lane padding and go back to PyTorch NCL layout (B, C, N)
    return tuple(
        jnp.transpose(o[:, :P].reshape(o.shape[0], B, N), (1, 0, 2)) for o in outs)


# ---------------- pure-JAX reference (for correctness check) ----------------
def reference(x, params):
    outs = []
    a = x
    for i, p in enumerate(params):
        c = jnp.einsum('oi,bin->bon', p['w'], a) + p['b'][None, :, :]
        outs.append(c)
        if i < len(params) - 1:
            mean = jnp.mean(c, axis=(0, 2), keepdims=True)
            var = jnp.mean((c - mean) ** 2, axis=(0, 2), keepdims=True)
            n = (p['gamma'][None, :, :] * (c - mean) / jnp.sqrt(var + BN_EPS)
                 + p['beta'][None, :, :])
            outs.append(n)
            r = jnp.maximum(n, 0.0)
            outs.append(r)
            a = r
    return outs


def init_params(key, channels):
    """channels = [3] + layers + [feature_dim]; deterministic synthetic init."""
    params = []
    n_convs = len(channels) - 1
    for i in range(n_convs):
        cin, cout = channels[i], channels[i + 1]
        key, kw, kb, kg, kbe = jax.random.split(key, 5)
        w = jax.random.normal(kw, (cout, cin), jnp.float32) / jnp.sqrt(float(cin))
        if i == n_convs - 1:
            b = jnp.zeros((cout, 1), jnp.float32)   # nn.init.constant_(last bias, 0.0)
        else:
            b = 0.1 * jax.random.normal(kb, (cout, 1), jnp.float32)
        p = {'w': w, 'b': b}
        if i < n_convs - 1:
            p['gamma'] = 1.0 + 0.1 * jax.random.normal(kg, (cout, 1), jnp.float32)
            p['beta'] = 0.1 * jax.random.normal(kbe, (cout, 1), jnp.float32)
        params.append(p)
    return params


def _check(x, params, tol=1e-3):
    refs = reference(x, params)

    # full forward (matches the PyTorch module's forward(): 13 outputs)
    outs = keypoint_encoder(x, params)
    outs = jax.block_until_ready(outs)
    assert len(outs) == 13
    for o, r in zip(outs, refs):
        assert o.shape == r.shape, (o.shape, r.shape)
        err = float(jnp.max(jnp.abs(o - r)))
        assert err < tol, err

    # writeback-light path: final conv output only
    fast = keypoint_encoder(x, params, return_intermediates=False)
    fast = jax.block_until_ready(fast)
    assert len(fast) == 1
    err = float(jnp.max(jnp.abs(fast[0] - refs[-1])))
    assert err < tol, err


if __name__ == "__main__":
    feature_dim = 32
    layers = [16, 16, 32, 32]
    channels = [3] + layers + [feature_dim]   # KeypointEncoder: MLP([3]+layers+[feature_dim])

    key = jax.random.PRNGKey(0)
    kx, kp, kx2 = jax.random.split(key, 3)
    params = init_params(kp, channels)

    # lane-aligned case (B*N multiple of 128)
    B, N = 2, 128
    x = jax.random.normal(kx, (B, 3, N), jnp.float32)
    _check(x, params)

    # non-lane-aligned case (exercises the padded-lane BN-stat mask)
    B2, N2 = 2, 100
    x2 = jax.random.normal(kx2, (B2, 3, N2), jnp.float32)
    _check(x2, params)

    print("KERNEL_OK")
</pallas_src>

<mosaic_0001>
module attributes {stable_mosaic.version = 11 : i64} {
  func.func @kernel(%arg0: memref<8x256xf32, #tpu.memory_space<vmem>>, %arg1: memref<16x8xf32, #tpu.memory_space<vmem>>, %arg2: memref<16x16xf32, #tpu.memory_space<vmem>>, %arg3: memref<32x16xf32, #tpu.memory_space<vmem>>, %arg4: memref<32x32xf32, #tpu.memory_space<vmem>>, %arg5: memref<32x32xf32, #tpu.memory_space<vmem>>, %arg6: memref<32x13xf32, #tpu.memory_space<vmem>>, %arg7: memref<16x256xf32, #tpu.memory_space<vmem>>, %arg8: memref<16x256xf32, #tpu.memory_space<vmem>>, %arg9: memref<16x256xf32, #tpu.memory_space<vmem>>, %arg10: memref<16x256xf32, #tpu.memory_space<vmem>>, %arg11: memref<16x256xf32, #tpu.memory_space<vmem>>, %arg12: memref<16x256xf32, #tpu.memory_space<vmem>>, %arg13: memref<32x256xf32, #tpu.memory_space<vmem>>, %arg14: memref<32x256xf32, #tpu.memory_space<vmem>>, %arg15: memref<32x256xf32, #tpu.memory_space<vmem>>, %arg16: memref<32x256xf32, #tpu.memory_space<vmem>>, %arg17: memref<32x256xf32, #tpu.memory_space<vmem>>, %arg18: memref<32x256xf32, #tpu.memory_space<vmem>>, %arg19: memref<32x256xf32, #tpu.memory_space<vmem>>) attributes {dimension_semantics = [], scalar_prefetch = 0 : i64, scratch_operands = 0 : i64, tpu.core_type = #tpu.core_type<tc>} {
    %c0 = arith.constant 0 : index
    %c0_0 = arith.constant 0 : index
    %0 = vector.load %arg0[%c0, %c0_0] : memref<8x256xf32, #tpu.memory_space<vmem>>, vector<8x256xf32>
    %c0_1 = arith.constant 0 : index
    %c0_2 = arith.constant 0 : index
    %1 = vector.load %arg1[%c0_1, %c0_2] : memref<16x8xf32, #tpu.memory_space<vmem>>, vector<16x8xf32>
    %cst = arith.constant dense<0.000000e+00> : vector<16x256xf32>
    %2 = tpu.matmul %1, %0, %cst {dimension_numbers = #tpu.dot_dimension_numbers<[1], [0], [0], [1], [0, 0, 1, 1], [], []>} : vector<16x8xf32>, vector<8x256xf32>, vector<16x256xf32> -> vector<16x256xf32>
    %c0_3 = arith.constant 0 : index
    %c0_4 = arith.constant 0 : index
    %3 = vector.load %arg6[%c0_3, %c0_4] : memref<32x13xf32, #tpu.memory_space<vmem>>, vector<16x1xf32>
    %4 = vector.broadcast %3 : vector<16x1xf32> to vector<16x256xf32>
    %5 = arith.addf %2, %4 : vector<16x256xf32>
    %c0_5 = arith.constant 0 : index
    %c0_6 = arith.constant 0 : index
    %6 = vector.load %arg7[%c0_5, %c0_6] : memref<16x256xf32, #tpu.memory_space<vmem>>, vector<16x256xf32>
    tpu.vector_store %arg7[%c0_5, %c0_6], %5 {strides = array<i32>} : memref<16x256xf32, #tpu.memory_space<vmem>>, vector<16x256xf32>,
    %cst_7 = arith.constant dense<0.000000e+00> : vector<16xf32>
    %7 = vector.multi_reduction <add>, %5, %cst_7 [1] : vector<16x256xf32> to vector<16xf32>
    %8 = vector.shape_cast %7 : vector<16xf32> to vector<16x1xf32>
    %cst_8 = arith.constant 3.906250e-03 : f32
    %9 = vector.broadcast %cst_8 : f32 to vector<16x1xf32>
    %10 = arith.mulf %8, %9 : vector<16x1xf32>
    %11 = arith.mulf %5, %5 : vector<16x256xf32>
    %cst_9 = arith.constant dense<0.000000e+00> : vector<16xf32>
    %12 = vector.multi_reduction <add>, %11, %cst_9 [1] : vector<16x256xf32> to vector<16xf32>
    %13 = vector.shape_cast %12 : vector<16xf32> to vector<16x1xf32>
    %cst_10 = arith.constant 3.906250e-03 : f32
    %14 = vector.broadcast %cst_10 : f32 to vector<16x1xf32>
    %15 = arith.mulf %13, %14 : vector<16x1xf32>
    %16 = arith.mulf %10, %10 : vector<16x1xf32>
    %17 = arith.subf %15, %16 : vector<16x1xf32>
    %c0_11 = arith.constant 0 : index
    %c5 = arith.constant 5 : index
    %18 = vector.load %arg6[%c0_11, %c5] : memref<32x13xf32, #tpu.memory_space<vmem>>, vector<16x1xf32>
    %cst_12 = arith.constant 9.99999974E-6 : f32
    %19 = vector.broadcast %cst_12 : f32 to vector<16x1xf32>
    %20 = arith.addf %17, %19 : vector<16x1xf32>
    %21 = math.rsqrt %20 : vector<16x1xf32>
    %22 = arith.mulf %18, %21 : vector<16x1xf32>
    %c0_13 = arith.constant 0 : index
    %c9 = arith.constant 9 : index
    %23 = vector.load %arg6[%c0_13, %c9] : memref<32x13xf32, #tpu.memory_space<vmem>>, vector<16x1xf32>
    %24 = arith.mulf %22, %10 : vector<16x1xf32>
    %25 = arith.subf %23, %24 : vector<16x1xf32>
    %26 = vector.broadcast %22 : vector<16x1xf32> to vector<16x256xf32>
    %27 = arith.mulf %26, %5 : vector<16x256xf32>
    %28 = vector.broadcast %25 : vector<16x1xf32> to vector<16x256xf32>
    %29 = arith.addf %27, %28 : vector<16x256xf32>
    %c0_14 = arith.constant 0 : index
    %c0_15 = arith.constant 0 : index
    %30 = vector.load %arg8[%c0_14, %c0_15] : memref<16x256xf32, #tpu.memory_space<vmem>>, vector<16x256xf32>
    tpu.vector_store %arg8[%c0_14, %c0_15], %29 {strides = array<i32>} : memref<16x256xf32, #tpu.memory_space<vmem>>, vector<16x256xf32>,
    %cst_16 = arith.constant 0.000000e+00 : f32
    %31 = vector.broadcast %cst_16 : f32 to vector<16x256xf32>
    %32 = arith.maximumf %29, %31 : vector<16x256xf32>
    %c0_17 = arith.constant 0 : index
    %c0_18 = arith.constant 0 : index
    %33 = vector.load %arg9[%c0_17, %c0_18] : memref<16x256xf32, #tpu.memory_space<vmem>>, vector<16x256xf32>
    tpu.vector_store %arg9[%c0_17, %c0_18], %32 {strides = array<i32>} : memref<16x256xf32, #tpu.memory_space<vmem>>, vector<16x256xf32>,
    %c0_19 = arith.constant 0 : index
    %c0_20 = arith.constant 0 : index
    %34 = vector.load %arg2[%c0_19, %c0_20] : memref<16x16xf32, #tpu.memory_space<vmem>>, vector<16x16xf32>
    %cst_21 = arith.constant dense<0.000000e+00> : vector<16x256xf32>
    %35 = tpu.matmul %34, %32, %cst_21 {dimension_numbers = #tpu.dot_dimension_numbers<[1], [0], [0], [1], [0, 0, 1, 1], [], []>} : vector<16x16xf32>, vector<16x256xf32>, vector<16x256xf32> -> vector<16x256xf32>
    %c0_22 = arith.constant 0 : index
    %c1 = arith.constant 1 : index
    %36 = vector.load %arg6[%c0_22, %c1] : memref<32x13xf32, #tpu.memory_space<vmem>>, vector<16x1xf32>
    %37 = vector.broadcast %36 : vector<16x1xf32> to vector<16x256xf32>
    %38 = arith.addf %35, %37 : vector<16x256xf32>
    %c0_23 = arith.constant 0 : index
    %c0_24 = arith.constant 0 : index
    %39 = vector.load %arg10[%c0_23, %c0_24] : memref<16x256xf32, #tpu.memory_space<vmem>>, vector<16x256xf32>
    tpu.vector_store %arg10[%c0_23, %c0_24], %38 {strides = array<i32>} : memref<16x256xf32, #tpu.memory_space<vmem>>, vector<16x256xf32>,
    %cst_25 = arith.constant dense<0.000000e+00> : vector<16xf32>
    %40 = vector.multi_reduction <add>, %38, %cst_25 [1] : vector<16x256xf32> to vector<16xf32>
    %41 = vector.shape_cast %40 : vector<16xf32> to vector<16x1xf32>
    %cst_26 = arith.constant 3.906250e-03 : f32
    %42 = vector.broadcast %cst_26 : f32 to vector<16x1xf32>
    %43 = arith.mulf %41, %42 : vector<16x1xf32>
    %44 = arith.mulf %38, %38 : vector<16x256xf32>
    %cst_27 = arith.constant dense<0.000000e+00> : vector<16xf32>
    %45 = vector.multi_reduction <add>, %44, %cst_27 [1] : vector<16x256xf32> to vector<16xf32>
    %46 = vector.shape_cast %45 : vector<16xf32> to vector<16x1xf32>
    %cst_28 = arith.constant 3.906250e-03 : f32
    %47 = vector.broadcast %cst_28 : f32 to vector<16x1xf32>
    %48 = arith.mulf %46, %47 : vector<16x1xf32>
    %49 = arith.mulf %43, %43 : vector<16x1xf32>
    %50 = arith.subf %48, %49 : vector<16x1xf32>
    %c0_29 = arith.constant 0 : index
    %c6 = arith.constant 6 : index
    %51 = vector.load %arg6[%c0_29, %c6] : memref<32x13xf32, #tpu.memory_space<vmem>>, vector<16x1xf32>
    %cst_30 = arith.constant 9.99999974E-6 : f32
    %52 = vector.broadcast %cst_30 : f32 to vector<16x1xf32>
    %53 = arith.addf %50, %52 : vector<16x1xf32>
    %54 = math.rsqrt %53 : vector<16x1xf32>
    %55 = arith.mulf %51, %54 : vector<16x1xf32>
    %c0_31 = arith.constant 0 : index
    %c10 = arith.constant 10 : index
    %56 = vector.load %arg6[%c0_31, %c10] : memref<32x13xf32, #tpu.memory_space<vmem>>, vector<16x1xf32>
    %57 = arith.mulf %55, %43 : vector<16x1xf32>
    %58 = arith.subf %56, %57 : vector<16x1xf32>
    %59 = vector.broadcast %55 : vector<16x1xf32> to vector<16x256xf32>
    %60 = arith.mulf %59, %38 : vector<16x256xf32>
    %61 = vector.broadcast %58 : vector<16x1xf32> to vector<16x256xf32>
    %62 = arith.addf %60, %61 : vector<16x256xf32>
    %c0_32 = arith.constant 0 : index
    %c0_33 = arith.constant 0 : index
    %63 = vector.load %arg11[%c0_32, %c0_33] : memref<16x256xf32, #tpu.memory_space<vmem>>, vector<16x256xf32>
    tpu.vector_store %arg11[%c0_32, %c0_33], %62 {strides = array<i32>} : memref<16x256xf32, #tpu.memory_space<vmem>>, vector<16x256xf32>,
    %cst_34 = arith.constant 0.000000e+00 : f32
    %64 = vector.broadcast %cst_34 : f32 to vector<16x256xf32>
    %65 = arith.maximumf %62, %64 : vector<16x256xf32>
    %c0_35 = arith.constant 0 : index
    %c0_36 = arith.constant 0 : index
    %66 = vector.load %arg12[%c0_35, %c0_36] : memref<16x256xf32, #tpu.memory_space<vmem>>, vector<16x256xf32>
    tpu.vector_store %arg12[%c0_35, %c0_36], %65 {strides = array<i32>} : memref<16x256xf32, #tpu.memory_space<vmem>>, vector<16x256xf32>,
    %c0_37 = arith.constant 0 : index
    %c0_38 = arith.constant 0 : index
    %67 = vector.load %arg3[%c0_37, %c0_38] : memref<32x16xf32, #tpu.memory_space<vmem>>, vector<32x16xf32>
    %cst_39 = arith.constant dense<0.000000e+00> : vector<32x256xf32>
    %68 = tpu.matmul %67, %65, %cst_39 {dimension_numbers = #tpu.dot_dimension_numbers<[1], [0], [0], [1], [0, 0, 1, 1], [], []>} : vector<32x16xf32>, vector<16x256xf32>, vector<32x256xf32> -> vector<32x256xf32>
    %c0_40 = arith.constant 0 : index
    %c2 = arith.constant 2 : index
    %69 = vector.load %arg6[%c0_40, %c2] : memref<32x13xf32, #tpu.memory_space<vmem>>, vector<32x1xf32>
    %70 = vector.broadcast %69 : vector<32x1xf32> to vector<32x256xf32>
    %71 = arith.addf %68, %70 : vector<32x256xf32>
    %c0_41 = arith.constant 0 : index
    %c0_42 = arith.constant 0 : index
    %72 = vector.load %arg13[%c0_41, %c0_42] : memref<32x256xf32, #tpu.memory_space<vmem>>, vector<32x256xf32>
    tpu.vector_store %arg13[%c0_41, %c0_42], %71 {strides = array<i32>} : memref<32x256xf32, #tpu.memory_space<vmem>>, vector<32x256xf32>,
    %cst_43 = arith.constant dense<0.000000e+00> : vector<32xf32>
    %73 = vector.multi_reduction <add>, %71, %cst_43 [1] : vector<32x256xf32> to vector<32xf32>
    %74 = vector.shape_cast %73 : vector<32xf32> to vector<32x1xf32>
    %cst_44 = arith.constant 3.906250e-03 : f32
    %75 = vector.broadcast %cst_44 : f32 to vector<32x1xf32>
    %76 = arith.mulf %74, %75 : vector<32x1xf32>
    %77 = arith.mulf %71, %71 : vector<32x256xf32>
    %cst_45 = arith.constant dense<0.000000e+00> : vector<32xf32>
    %78 = vector.multi_reduction <add>, %77, %cst_45 [1] : vector<32x256xf32> to vector<32xf32>
    %79 = vector.shape_cast %78 : vector<32xf32> to vector<32x1xf32>
    %cst_46 = arith.constant 3.906250e-03 : f32
    %80 = vector.broadcast %cst_46 : f32 to vector<32x1xf32>
    %81 = arith.mulf %79, %80 : vector<32x1xf32>
    %82 = arith.mulf %76, %76 : vector<32x1xf32>
    %83 = arith.subf %81, %82 : vector<32x1xf32>
    %c0_47 = arith.constant 0 : index
    %c7 = arith.constant 7 : index
    %84 = vector.load %arg6[%c0_47, %c7] : memref<32x13xf32, #tpu.memory_space<vmem>>, vector<32x1xf32>
    %cst_48 = arith.constant 9.99999974E-6 : f32
    %85 = vector.broadcast %cst_48 : f32 to vector<32x1xf32>
    %86 = arith.addf %83, %85 : vector<32x1xf32>
    %87 = math.rsqrt %86 : vector<32x1xf32>
    %88 = arith.mulf %84, %87 : vector<32x1xf32>
    %c0_49 = arith.constant 0 : index
    %c11 = arith.constant 11 : index
    %89 = vector.load %arg6[%c0_49, %c11] : memref<32x13xf32, #tpu.memory_space<vmem>>, vector<32x1xf32>
    %90 = arith.mulf %88, %76 : vector<32x1xf32>
    %91 = arith.subf %89, %90 : vector<32x1xf32>
    %92 = vector.broadcast %88 : vector<32x1xf32> to vector<32x256xf32>
    %93 = arith.mulf %92, %71 : vector<32x256xf32>
    %94 = vector.broadcast %91 : vector<32x1xf32> to vector<32x256xf32>
    %95 = arith.addf %93, %94 : vector<32x256xf32>
    %c0_50 = arith.constant 0 : index
    %c0_51 = arith.constant 0 : index
    %96 = vector.load %arg14[%c0_50, %c0_51] : memref<32x256xf32, #tpu.memory_space<vmem>>, vector<32x256xf32>
    tpu.vector_store %arg14[%c0_50, %c0_51], %95 {strides = array<i32>} : memref<32x256xf32, #tpu.memory_space<vmem>>, vector<32x256xf32>,
    %cst_52 = arith.constant 0.000000e+00 : f32
    %97 = vector.broadcast %cst_52 : f32 to vector<32x256xf32>
    %98 = arith.maximumf %95, %97 : vector<32x256xf32>
    %c0_53 = arith.constant 0 : index
    %c0_54 = arith.constant 0 : index
    %99 = vector.load %arg15[%c0_53, %c0_54] : memref<32x256xf32, #tpu.memory_space<vmem>>, vector<32x256xf32>
    tpu.vector_store %arg15[%c0_53, %c0_54], %98 {strides = array<i32>} : memref<32x256xf32, #tpu.memory_space<vmem>>, vector<32x256xf32>,
    %c0_55 = arith.constant 0 : index
    %c0_56 = arith.constant 0 : index
    %100 = vector.load %arg4[%c0_55, %c0_56] : memref<32x32xf32, #tpu.memory_space<vmem>>, vector<32x32xf32>
    %cst_57 = arith.constant dense<0.000000e+00> : vector<32x256xf32>
    %101 = tpu.matmul %100, %98, %cst_57 {dimension_numbers = #tpu.dot_dimension_numbers<[1], [0], [0], [1], [0, 0, 1, 1], [], []>} : vector<32x32xf32>, vector<32x256xf32>, vector<32x256xf32> -> vector<32x256xf32>
    %c0_58 = arith.constant 0 : index
    %c3 = arith.constant 3 : index
    %102 = vector.load %arg6[%c0_58, %c3] : memref<32x13xf32, #tpu.memory_space<vmem>>, vector<32x1xf32>
    %103 = vector.broadcast %102 : vector<32x1xf32> to vector<32x256xf32>
    %104 = arith.addf %101, %103 : vector<32x256xf32>
    %c0_59 = arith.constant 0 : index
    %c0_60 = arith.constant 0 : index
    %105 = vector.load %arg16[%c0_59, %c0_60] : memref<32x256xf32, #tpu.memory_space<vmem>>, vector<32x256xf32>
    tpu.vector_store %arg16[%c0_59, %c0_60], %104 {strides = array<i32>} : memref<32x256xf32, #tpu.memory_space<vmem>>, vector<32x256xf32>,
    %cst_61 = arith.constant dense<0.000000e+00> : vector<32xf32>
    %106 = vector.multi_reduction <add>, %104, %cst_61 [1] : vector<32x256xf32> to vector<32xf32>
    %107 = vector.shape_cast %106 : vector<32xf32> to vector<32x1xf32>
    %cst_62 = arith.constant 3.906250e-03 : f32
    %108 = vector.broadcast %cst_62 : f32 to vector<32x1xf32>
    %109 = arith.mulf %107, %108 : vector<32x1xf32>
    %110 = arith.mulf %104, %104 : vector<32x256xf32>
    %cst_63 = arith.constant dense<0.000000e+00> : vector<32xf32>
    %111 = vector.multi_reduction <add>, %110, %cst_63 [1] : vector<32x256xf32> to vector<32xf32>
    %112 = vector.shape_cast %111 : vector<32xf32> to vector<32x1xf32>
    %cst_64 = arith.constant 3.906250e-03 : f32
    %113 = vector.broadcast %cst_64 : f32 to vector<32x1xf32>
    %114 = arith.mulf %112, %113 : vector<32x1xf32>
    %115 = arith.mulf %109, %109 : vector<32x1xf32>
    %116 = arith.subf %114, %115 : vector<32x1xf32>
    %c0_65 = arith.constant 0 : index
    %c8 = arith.constant 8 : index
    %117 = vector.load %arg6[%c0_65, %c8] : memref<32x13xf32, #tpu.memory_space<vmem>>, vector<32x1xf32>
    %cst_66 = arith.constant 9.99999974E-6 : f32
    %118 = vector.broadcast %cst_66 : f32 to vector<32x1xf32>
    %119 = arith.addf %116, %118 : vector<32x1xf32>
    %120 = math.rsqrt %119 : vector<32x1xf32>
    %121 = arith.mulf %117, %120 : vector<32x1xf32>
    %c0_67 = arith.constant 0 : index
    %c12 = arith.constant 12 : index
    %122 = vector.load %arg6[%c0_67, %c12] : memref<32x13xf32, #tpu.memory_space<vmem>>, vector<32x1xf32>
    %123 = arith.mulf %121, %109 : vector<32x1xf32>
    %124 = arith.subf %122, %123 : vector<32x1xf32>
    %125 = vector.broadcast %121 : vector<32x1xf32> to vector<32x256xf32>
    %126 = arith.mulf %125, %104 : vector<32x256xf32>
    %127 = vector.broadcast %124 : vector<32x1xf32> to vector<32x256xf32>
    %128 = arith.addf %126, %127 : vector<32x256xf32>
    %c0_68 = arith.constant 0 : index
    %c0_69 = arith.constant 0 : index
    %129 = vector.load %arg17[%c0_68, %c0_69] : memref<32x256xf32, #tpu.memory_space<vmem>>, vector<32x256xf32>
    tpu.vector_store %arg17[%c0_68, %c0_69], %128 {strides = array<i32>} : memref<32x256xf32, #tpu.memory_space<vmem>>, vector<32x256xf32>,
    %cst_70 = arith.constant 0.000000e+00 : f32
    %130 = vector.broadcast %cst_70 : f32 to vector<32x256xf32>
    %131 = arith.maximumf %128, %130 : vector<32x256xf32>
    %c0_71 = arith.constant 0 : index
    %c0_72 = arith.constant 0 : index
    %132 = vector.load %arg18[%c0_71, %c0_72] : memref<32x256xf32, #tpu.memory_space<vmem>>, vector<32x256xf32>
    tpu.vector_store %arg18[%c0_71, %c0_72], %131 {strides = array<i32>} : memref<32x256xf32, #tpu.memory_space<vmem>>, vector<32x256xf32>,
    %c0_73 = arith.constant 0 : index
    %c0_74 = arith.constant 0 : index
    %133 = vector.load %arg5[%c0_73, %c0_74] : memref<32x32xf32, #tpu.memory_space<vmem>>, vector<32x32xf32>
    %cst_75 = arith.constant dense<0.000000e+00> : vector<32x256xf32>
    %134 = tpu.matmul %133, %131, %cst_75 {dimension_numbers = #tpu.dot_dimension_numbers<[1], [0], [0], [1], [0, 0, 1, 1], [], []>} : vector<32x32xf32>, vector<32x256xf32>, vector<32x256xf32> -> vector<32x256xf32>
    %c0_76 = arith.constant 0 : index
    %c4 = arith.constant 4 : index
    %135 = vector.load %arg6[%c0_76, %c4] : memref<32x13xf32, #tpu.memory_space<vmem>>, vector<32x1xf32>
    %136 = vector.broadcast %135 : vector<32x1xf32> to vector<32x256xf32>
    %137 = arith.addf %134, %136 : vector<32x256xf32>
    %c0_77 = arith.constant 0 : index
    %c0_78 = arith.constant 0 : index
    %138 = vector.load %arg19[%c0_77, %c0_78] : memref<32x256xf32, #tpu.memory_space<vmem>>, vector<32x256xf32>
    tpu.vector_store %arg19[%c0_77, %c0_78], %137 {strides = array<i32>} : memref<32x256xf32, #tpu.memory_space<vmem>>, vector<32x256xf32>,
    return
  }
}

</mosaic_0001>

<bundles_post_ra>
// kernel: tpu_custom_call.1
= control target key start
LH: loop header
LB: loop body
LE: loop exit
PB: predicated region body
PF: predicated region fallthrough
CT: control target
= control target key end

     0   :  { %s2373_s0 = inlined_call_operand.vmem [shape: f32[8,256], index: 0, kind: input, shape index: {}]   ;;  %s2374_s1 = inlined_call_operand.vmem [shape: f32[16,8], index: 1, kind: input, shape index: {}]   ;;  %s2375_s2 = inlined_call_operand.hbm [shape: f32[16,16], index: 2, kind: input, shape index: {}]   ;;  %s2376_s3 = inlined_call_operand.vmem [shape: f32[32,16], index: 3, kind: input, shape index: {}]   ;;  %s2377_s4 = inlined_call_operand.vmem [shape: f32[32,32], index: 4, kind: input, shape index: {}]   ;;  %s2378_s5 = inlined_call_operand.vmem [shape: f32[32,32], index: 5, kind: input, shape index: {}]   ;;  %s2379_s6 = inlined_call_operand.vmem [shape: f32[32,13], index: 6, kind: input, shape index: {}]   ;;  %s2380_s7 = inlined_call_operand.hbm [shape: f32[16,256], index: 7, kind: output, shape index: {0}]   ;;  %s2381_s8 = inlined_call_operand.hbm [shape: f32[16,256], index: 8, kind: output, shape index: {1}]   ;;  %s2382_s9 = inlined_call_operand.hbm [shape: f32[16,256], index: 9, kind: output, shape index: {2}]   ;;  %s2383_s10 = inlined_call_operand.hbm [shape: f32[16,256], index: 10, kind: output, shape index: {3}]   ;;  %s2384_s11 = inlined_call_operand.hbm [shape: f32[16,256], index: 11, kind: output, shape index: {4}]   ;;  %s2385_s12 = inlined_call_operand.hbm [shape: f32[16,256], index: 12, kind: output, shape index: {5}]   ;;  %s2386_s13 = inlined_call_operand.hbm [shape: f32[32,256], index: 13, kind: output, shape index: {6}]   ;;  %s2387_s14 = inlined_call_operand.hbm [shape: f32[32,256], index: 14, kind: output, shape index: {7}]   ;;  %s2388_s15 = inlined_call_operand.hbm [shape: f32[32,256], index: 15, kind: output, shape index: {8}]   ;;  %s2389_s16 = inlined_call_operand.hbm [shape: f32[32,256], index: 16, kind: output, shape index: {9}]   ;;  %s2390_s17 = inlined_call_operand.hbm [shape: f32[32,256], index: 17, kind: output, shape index: {10}]   ;;  %s2391_s18 = inlined_call_operand.hbm [shape: f32[32,256], index: 18, kind: output, shape index: {11}]   ;;  %s2392_s19 = inlined_call_operand.hbm [shape: f32[32,256], index: 19, kind: output, shape index: {12}]  }
   0x1   :  { %2396 = sst [smem:[#allocation32_spill]] %s2373_s0 }
   0x2   :  { %2397 = sst [smem:[#allocation33_spill]] %s2374_s1 }
   0x3   :  { %2398 = sst [smem:[#allocation34_spill]] %s2375_s2 }
   0x4   :  { %2399 = sst [smem:[#allocation35_spill]] %s2376_s3 }
   0x5   :  { %25 = vsyncpa [#allocation3], 0 }
   0x6   :  { %26 = vsyncpa [#allocation4], 0 }
   0x7   :  { %27 = vsyncpa [#allocation7], 0 }
   0x8   :  { %28 = vsyncpa [#allocation10], 0 }
   0x9   :  { %29 = vsyncpa [#allocation13], 0 }
   0xa   :  { %30 = vsyncpa [#allocation16], 0 }
   0xb   :  { %31 = vsyncpa [#allocation19], 0 }
   0xc   :  { %32 = vsyncpa [#allocation22], 0  ;;  %s2400_s20 = sld [smem:[#allocation34_spill]]  ;;  %s1834_s1 = smov [#allocation2]  }
   0xd   :  { %s43_s22 = sshll.u32 %s1834_s1, 4  ;;  %s1835_s2 = smov 128   ;;  %s44_s22 = int_to_ptr.vmem [resolvable:$true] %s43_s22 }
   0xe   :  { %s1836_s23 = smov 8  }
  0x12   :  { %s41_s21 = sshll.u32 %s2400_s20, 4  ;;  %s42_s21 = int_to_ptr.hbm [resolvable:$true] %s41_s21 }
  0x13   :  { %49 = dma.hbm_to_vmem [thread:$0]  %s42_s21, 256, %s44_s22, [#allocation3], %s1835_s2, %s1835_s2, %s1836_s23  }
  0x14   :  { %1818 = dma.done.wait [#allocation3], 256  }
  0x15   :  { %1819 = vsyncadd [#allocation3], 4294967040  ;;  %v1837_v0 = vmov 0   ;;  %vm78_vm0 = vcmask 64512   ;;  %s2401_s3 = sld [smem:[#allocation32_spill]]  ;;  %v1981_v4 = vld [vmem:[%s2379_s6 + $0x8] sm:$0xff] }
  0x16   :  { %1430 = vset.pattern.permute.xlu0 %v1837_v0  ;;  %s2402_s0 = sld [smem:[#allocation33_spill]]  ;;  %v1990_v6 = vld [vmem:[%s2379_s6] sm:$0xff]  ;;  %v1838_v25 = vmov 5   ;;  %s1839_s23 = smov 4   ;;  %v1840_v58 = vmov 9   ;;  %vm251_vm7 = vcmask 130048  }
  0x17   :  { %75 = vperm.xlu0 %1430, %v1981_v4   ;;  %1431 = vset.pattern.permute.xlu2 %v1838_v25  ;;  %s2403_s29 = sld [smem:[#allocation35_spill]]  ;;  %s1854_s30 = smov [#allocation9]  }
  0x18   :  { %s1208_s1 = sshll.u32 %s2385_s12, 4  ;;  %s1855_s22 = smov [#allocation12]   ;;  %s1209_s1 = int_to_ptr.hbm [resolvable:$true] %s1208_s1 }
  0x19   :  { %s1206_s2 = sshll.u32 %s1855_s22, 4  ;;  %s1856_s24 = smov [#allocation15]   ;;  %s1207_s2 = int_to_ptr.vmem [resolvable:$true] %s1206_s2 }
  0x1a   :  { %s1260_s28 = sshll.u32 %s2389_s16, 4  ;;  %s1143_s21 = sshll.u32 %s2380_s7, 4  ;;  %s1261_s28 = int_to_ptr.hbm [resolvable:$true] %s1260_s28  ;;  %s1144_s21 = int_to_ptr.hbm [resolvable:$true] %s1143_s21 }
  0x1b   :  { %v62_v1 = vld [vmem:[%s2401_s3] sm:$0xff]  ;;  %v63_v2 = vld [vmem:[%s2401_s3 + $0x8] sm:$0xff]  ;;  %s1851_s3 = smov [#allocation6]   ;;  %s1169_s25 = sshll.u32 %s2382_s9, 4  ;;  %s1170_s25 = int_to_ptr.hbm [resolvable:$true] %s1169_s25 }
  0x1c   :  { %v64_v3 = vld [vmem:[%s2402_s0] sm:$0xff]  ;;  %100 = vmatpush.msra.mxu2 %v62_v1  ;;  %123 = vmatpush.msra.mxu3 %v63_v2  ;;  %v65_v5 = vld [vmem:[%s2402_s0 + $0x8] sm:$0xff]  ;;  %s1154_s26 = sshll.u32 %s1851_s3, 4  ;;  %s1853_s0 = smov 16   ;;  %s1155_s26 = int_to_ptr.vmem [resolvable:$true] %s1154_s26 }
  0x1d   :  { %1366 = vmatmul.msk.f32.vlgmr.msra.gmra.mxu2 %vm78_vm0, %v64_v3  ;;  %1368 = vmatmul.msk.f32.vlgmr.msra.gmra.mxu3 %vm78_vm0, %v64_v3  ;;  %s1861_s12 = smov [#allocation11]   ;;  %s1247_s20 = sshll.u32 %s2388_s15, 4  ;;  %s1248_s20 = int_to_ptr.hbm [resolvable:$true] %s1247_s20 }
  0x1e   :  { %s1193_s27 = sshll.u32 %s1861_s12, 4  ;;  %s1864_s16 = smov [#allocation20]   ;;  %s1194_s27 = int_to_ptr.vmem [resolvable:$true] %s1193_s27 }
  0x1f   :  { %70 = vperm.xlu0 %1430, %v1990_v6   ;;  %s1865_s15 = smov [#allocation23]  }
  0x25   :  { %1367 = vmatmul.msk.f32.gmra.mxu2 %vm78_vm0, %v65_v5  ;;  %1369 = vmatmul.msk.f32.gmra.mxu3 %vm78_vm0, %v65_v5 }
  0x27   :  { %1432 = vset.pattern.permute.xlu0 %v1838_v25 }
  0x89   :  { %v76_v7 = vpop.permute.xlu0 %75 }
  0x91   :  { %v71_v8 = vpop.permute.xlu0 %70 }
  0xa0   :  { %v102_v9 = vpop.f32.mrf.mxu2  ;;  %v125_v10 = vpop.f32.mrf.mxu3 }
  0xa1   :  { %v1993_v11 = vadd.f32 %v102_v9, %v71_v8  ;;  %v1995_v12 = vadd.f32 %v125_v10, %v71_v8  ;;  %v1841_v8 = vmov 1  }
  0xa2   :  { %1435 = vset.pattern.permute.xlu1 %v1841_v8 }
  0xa3   :  { %131 = vst [vmem:[#allocation5] sm:$0xff] %v1993_v11  ;;  %v143_v21 = vmul.f32 %v1993_v11, %v1993_v11  ;;  %v144_v22 = vmul.f32 %v1995_v12, %v1995_v12  ;;  %v135_v23 = vadd.f32 %v1995_v12, %v1993_v11 }
  0xa4   :  { %132 = vst [vmem:[#allocation5 + $0x8] sm:$0xff] %v1995_v12 }
  0xa5   :  { %v147_v24 = vadd.f32 %v144_v22, %v143_v21 }
  0xa8   :  { %v105_v13 = vpop.f32.mrf.mxu2  ;;  %v128_v14 = vpop.f32.mrf.mxu3 }
  0xa9   :  { %v1999_v15 = vadd.f32 %v105_v13, %v76_v7  ;;  %v2001_v16 = vadd.f32 %v128_v14, %v76_v7 }
  0xab   :  { %133 = vst [vmem:[#allocation5 + $0x10] sm:$0xff] %v1999_v15  ;;  %v138_v17 = vadd.f32 %v2001_v16, %v1999_v15  ;;  %v145_v18 = vmul.f32 %v1999_v15, %v1999_v15  ;;  %v146_v19 = vmul.f32 %v2001_v16, %v2001_v16 }
  0xac   :  { %134 = vst [vmem:[#allocation5 + $0x18] sm:$0xff] %v2001_v16 }
  0xad   :  { %139 = vadd.xlane.f32.xlu1 %v138_v17  ;;  %v150_v20 = vadd.f32 %v146_v19, %v145_v18 }
  0xaf   :  { %151 = vadd.xlane.f32.xlu2 %v150_v20  ;;  %v237_v20 = vld [vmem:[#allocation2] sm:$0xff] }
  0xb5   :  { %136 = vadd.xlane.f32.xlu1 %v135_v23 }
  0xb7   :  { %148 = vadd.xlane.f32.xlu2 %v147_v24 }
 0x120   :  { %v140_v26 = vpop.xlane.xlu1 %139 }
 0x121   :  { %v142_v27 = vmul.f32 0.00390625, %v140_v26 }
 0x122   :  { %v152_v28 = vpop.xlane.xlu2 %151 }
 0x123   :  { %v156_v29 = vmul.f32 %v142_v27, %v142_v27  ;;  %v154_v30 = vmul.f32 0.00390625, %v152_v28 }
 0x125   :  { %v158_v31 = vsub.f32 %v154_v30, %v156_v29 }
 0x127   :  { %v162_v32 = vadd.f32 1e-05, %v158_v31 }
 0x128   :  { %v137_v33 = vpop.xlane.xlu1 %136 }
 0x129   :  { %1458 = vrsqrt.f32 %v162_v32  ;;  %v141_v34 = vmul.f32 0.00390625, %v137_v33  ;;  %vm179_vm2 = vweird.f32 %v162_v32 }
 0x12a   :  { %v149_v35 = vpop.xlane.xlu2 %148 }
 0x12b   :  { %v155_v36 = vmul.f32 %v141_v34, %v141_v34  ;;  %v153_v37 = vmul.f32 0.00390625, %v149_v35 }
 0x12d   :  { %v157_v38 = vsub.f32 %v153_v37, %v155_v36 }
 0x12f   :  { %v1459_v39 = vpop.eup %1458  ;;  %v161_v40 = vadd.f32 1e-05, %v157_v38  ;;  %v1842_v38 = vmov 6  }
 0x130   :  { %v174_v41 = vmul.f32 %v1459_v39, %v162_v32  ;;  %vm180_vm1 = vweird.f32 %v1459_v39 }
 0x131   :  { %1460 = vrsqrt.f32 %v161_v40  ;;  %vm181_vm3 = vmor %vm179_vm2, %vm180_vm1  ;;  %vm169_vm5 = vweird.f32 %v161_v40 }
 0x132   :  { %v175_v42 = vmul.f32 %v1459_v39, %v174_v41 }
 0x134   :  { %v176_v43 = vmul.f32 0.5, %v175_v42 }
 0x136   :  { %v177_v44 = vsub.f32 1.5, %v176_v43 }
 0x137   :  { %v1461_v45 = vpop.eup %1460 }
 0x138   :  { %v164_v46 = vmul.f32 %v1461_v45, %v161_v40  ;;  %v178_v47 = vmul.f32 %v1459_v39, %v177_v44  ;;  %vm170_vm4 = vweird.f32 %v1461_v45 }
 0x139   :  { %vm171_vm6 = vmor %vm169_vm5, %vm170_vm4 }
 0x13a   :  { %v165_v48 = vmul.f32 %v1461_v45, %v164_v46  ;;  %v182_v49 = vsel %vm181_vm3, %v1459_v39, %v178_v47 }
 0x13b   :  { %v184_v50 = vmul.f32 %v182_v49, %v1981_v4 }
 0x13c   :  { %v166_v51 = vmul.f32 0.5, %v165_v48 }
 0x13d   :  { %204 = vperm.xlu2 %1431, %v184_v50   ;;  %v186_v52 = vmul.f32 %v184_v50, %v142_v27 }
 0x13e   :  { %v167_v53 = vsub.f32 1.5, %v166_v51 }
 0x13f   :  { %191 = vrot.lane.b32.xlu0 %v186_v52, %s1839_s23 }
 0x140   :  { %v168_v54 = vmul.f32 %v1461_v45, %v167_v53 }
 0x142   :  { %v172_v55 = vsel %vm171_vm6, %v1461_v45, %v168_v54 }
 0x143   :  { %v183_v56 = vmul.f32 %v172_v55, %v1990_v6 }
 0x145   :  { %v185_v57 = vmul.f32 %v183_v56, %v141_v34  ;;  %1434 = vset.pattern.permute.xlu2 %v1840_v58 }
 0x147   :  { %199 = vperm.xlu0 %1432, %v183_v56   ;;  %189 = vrot.lane.b32.xlu1 %v185_v57, %s1839_s23 }
 0x14f   :  { %1433 = vset.pattern.permute.xlu0 %v1840_v58  ;;  %248 = vperm.xlu1 %1435, %v1981_v4  }
 0x157   :  { %1437 = vset.pattern.permute.xlu1 %v1842_v38 }
 0x197   :  { %v205_v63 = vpop.permute.xlu2 %204 }
 0x1b1   :  { %v192_v59 = vpop.permute.xlu0 %191 }
 0x1b2   :  { %v196_v60 = vsub.f32 %v1981_v4, %v192_v59 }
 0x1b4   :  { %218 = vperm.xlu0 %1433, %v196_v60  }
 0x1b9   :  { %v190_v61 = vpop.permute.xlu1 %189  ;;  %v200_v0 = vpop.permute.xlu0 %199 }
 0x1ba   :  { %v195_v62 = vsub.f32 %v1990_v6, %v190_v61  ;;  %v207_v1 = vmul.f32 %v200_v0, %v1993_v11  ;;  %v208_v2 = vmul.f32 %v200_v0, %v1995_v12  ;;  %v209_v11 = vmul.f32 %v205_v63, %v1999_v15  ;;  %v238_v15 = vld [vmem:[#allocation2 + $0x8] sm:$0xff] }
 0x1bb   :  { %v210_v12 = vmul.f32 %v205_v63, %v2001_v16 }
 0x1bc   :  { %213 = vperm.xlu2 %1434, %v195_v62   ;;  %1438 = vset.pattern.permute.xlu0 %v1842_v38 }
 0x1c1   :  { %v249_v26 = vpop.permute.xlu1 %248 }
 0x1c4   :  { %1436 = vset.pattern.permute.xlu2 %v1841_v8 }
 0x1c5   :  { %243 = vperm.xlu2 %1436, %v1990_v6  }
 0x216   :  { %v214_v3 = vpop.permute.xlu2 %213 }
 0x217   :  { %v221_v5 = vadd.f32 %v214_v3, %v207_v1  ;;  %v222_v7 = vadd.f32 %v214_v3, %v208_v2 }
 0x219   :  { %225 = vst [vmem:[#allocation6] sm:$0xff] %v221_v5  ;;  %v229_v9 = vmax.f32 %v221_v5, 0.0  ;;  %v230_v10 = vmax.f32 %v222_v7, 0.0 }
 0x21a   :  { %226 = vst [vmem:[#allocation6 + $0x8] sm:$0xff] %v222_v7 }
 0x21b   :  { %233 = vst [vmem:[#allocation8] sm:$0xff] %v229_v9 }
 0x21c   :  { %234 = vst [vmem:[#allocation8 + $0x8] sm:$0xff] %v230_v10 }
 0x21f   :  { %v244_v16 = vpop.permute.xlu2 %243 }
 0x226   :  { %v219_v13 = vpop.permute.xlu0 %218 }
 0x227   :  { %v223_v14 = vadd.f32 %v219_v13, %v209_v11  ;;  %v224_v17 = vadd.f32 %v219_v13, %v210_v12 }
 0x229   :  { %227 = vst [vmem:[#allocation6 + $0x10] sm:$0xff] %v223_v14  ;;  %v231_v18 = vmax.f32 %v223_v14, 0.0  ;;  %v232_v19 = vmax.f32 %v224_v17, 0.0 }
 0x22a   :  { %228 = vst [vmem:[#allocation6 + $0x18] sm:$0xff] %v224_v17 }
 0x22b   :  { %235 = vst [vmem:[#allocation8 + $0x10] sm:$0xff] %v231_v18  ;;  %272 = vmatpush.msrb.mxu2 %v231_v18  ;;  %295 = vmatpush.msrb.mxu3 %v232_v19 }
 0x22c   :  { %236 = vst [vmem:[#allocation8 + $0x18] sm:$0xff] %v232_v19 }
 0x22d   :  { %273 = vmatpush.msrb.mxu2 %v229_v9  ;;  %296 = vmatpush.msrb.mxu3 %v230_v10  ;;  %v1843_v9 = vmov 10  }
 0x22e   :  { %1370 = vmatmul.msk.f32.vlgmr.msrb.gmra.mxu2 %vm251_vm7, %v237_v20  ;;  %1372 = vmatmul.msk.f32.vlgmr.msrb.gmra.mxu3 %vm251_vm7, %v237_v20 }
 0x22f   :  { %1439 = vset.pattern.permute.xlu2 %v1843_v9 }
 0x236   :  { %1371 = vmatmul.msk.f32.gmra.mxu2 %vm251_vm7, %v238_v15  ;;  %1373 = vmatmul.msk.f32.gmra.mxu3 %vm251_vm7, %v238_v15 }
 0x2b1   :  { %v275_v21 = vpop.f32.mrf.mxu2  ;;  %v298_v22 = vpop.f32.mrf.mxu3 }
 0x2b2   :  { %v2033_v23 = vadd.f32 %v275_v21, %v244_v16  ;;  %v2035_v24 = vadd.f32 %v298_v22, %v244_v16  ;;  %v1844_v22 = vmov 2  }
 0x2b4   :  { %304 = vst [vmem:[#allocation9] sm:$0xff] %v2033_v23  ;;  %v308_v25 = vadd.f32 %v2035_v24, %v2033_v23  ;;  %v316_v35 = vmul.f32 %v2033_v23, %v2033_v23  ;;  %v317_v36 = vmul.f32 %v2035_v24, %v2035_v24 }
 0x2b5   :  { %305 = vst [vmem:[#allocation9 + $0x8] sm:$0xff] %v2035_v24 }
 0x2b6   :  { %309 = vadd.xlane.f32.xlu0 %v308_v25  ;;  %v320_v37 = vadd.f32 %v317_v36, %v316_v35  ;;  %v410_v35 = vld [vmem:[%s2403_s29] sm:$0xff]  ;;  %v413_v36 = vld [vmem:[%s2403_s29 + $0x18] sm:$0xff] }
 0x2b9   :  { %v278_v27 = vpop.f32.mrf.mxu2  ;;  %v301_v28 = vpop.f32.mrf.mxu3 }
 0x2ba   :  { %v2041_v29 = vadd.f32 %v278_v27, %v249_v26  ;;  %v2043_v30 = vadd.f32 %v301_v28, %v249_v26  ;;  %v2069_v26 = vld [vmem:[%s2379_s6 + $0x18] sm:$0xff]  ;;  %v2074_v27 = vld [vmem:[%s2379_s6 + $0x10] sm:$0xff] }
 0x2bc   :  { %306 = vst [vmem:[#allocation9 + $0x10] sm:$0xff] %v2041_v29  ;;  %v311_v31 = vadd.f32 %v2043_v30, %v2041_v29  ;;  %v318_v32 = vmul.f32 %v2041_v29, %v2041_v29  ;;  %v319_v33 = vmul.f32 %v2043_v30, %v2043_v30 }
 0x2bd   :  { %307 = vst [vmem:[#allocation9 + $0x18] sm:$0xff] %v2043_v30 }
 0x2be   :  { %312 = vadd.xlane.f32.xlu1 %v311_v31  ;;  %v323_v34 = vadd.f32 %v319_v33, %v318_v32 }
 0x2c0   :  { %324 = vadd.xlane.f32.xlu2 %v323_v34 }
 0x2c6   :  { %321 = vadd.xlane.f32.xlu1 %v320_v37 }
 0x329   :  { %v310_v41 = vpop.xlane.xlu0 %309 }
 0x32a   :  { %v314_v45 = vmul.f32 0.00390625, %v310_v41 }
 0x32c   :  { %v328_v49 = vmul.f32 %v314_v45, %v314_v45 }
 0x331   :  { %v313_v39 = vpop.xlane.xlu1 %312 }
 0x332   :  { %v315_v40 = vmul.f32 0.00390625, %v313_v39 }
 0x333   :  { %v325_v42 = vpop.xlane.xlu2 %324 }
 0x334   :  { %v329_v43 = vmul.f32 %v315_v40, %v315_v40  ;;  %v327_v44 = vmul.f32 0.00390625, %v325_v42 }
 0x336   :  { %v331_v46 = vsub.f32 %v327_v44, %v329_v43 }
 0x338   :  { %v335_v47 = vadd.f32 1e-05, %v331_v46 }
 0x339   :  { %v322_v48 = vpop.xlane.xlu1 %321 }
 0x33a   :  { %1462 = vrsqrt.f32 %v335_v47  ;;  %v326_v50 = vmul.f32 0.00390625, %v322_v48  ;;  %vm352_vm9 = vweird.f32 %v335_v47 }
 0x33c   :  { %v330_v51 = vsub.f32 %v326_v50, %v328_v49 }
 0x33e   :  { %v334_v52 = vadd.f32 1e-05, %v330_v51 }
 0x340   :  { %v1463_v53 = vpop.eup %1462  ;;  %1464 = vrsqrt.f32 %v334_v52  ;;  %vm342_vm12 = vweird.f32 %v334_v52 }
 0x341   :  { %v347_v54 = vmul.f32 %v1463_v53, %v335_v47  ;;  %vm353_vm8 = vweird.f32 %v1463_v53 }
 0x342   :  { %vm354_vm10 = vmor %vm352_vm9, %vm353_vm8 }
 0x343   :  { %v348_v55 = vmul.f32 %v1463_v53, %v347_v54 }
 0x345   :  { %v349_v56 = vmul.f32 0.5, %v348_v55 }
 0x346   :  { %v1465_v57 = vpop.eup %1464 }
 0x347   :  { %v350_v58 = vsub.f32 1.5, %v349_v56  ;;  %v337_v59 = vmul.f32 %v1465_v57, %v334_v52  ;;  %vm343_vm11 = vweird.f32 %v1465_v57 }
 0x348   :  { %vm344_vm13 = vmor %vm342_vm12, %vm343_vm11 }
 0x349   :  { %v338_v60 = vmul.f32 %v1465_v57, %v337_v59  ;;  %v351_v61 = vmul.f32 %v1463_v53, %v350_v58 }
 0x34b   :  { %v339_v62 = vmul.f32 0.5, %v338_v60  ;;  %v355_v63 = vsel %vm354_vm10, %v1463_v53, %v351_v61  ;;  %vm748_vm10 = vcmask 261120  }
 0x34c   :  { %v357_v0 = vmul.f32 %v355_v63, %v1981_v4 }
 0x34d   :  { %v340_v1 = vsub.f32 1.5, %v339_v62 }
 0x34e   :  { %377 = vperm.xlu1 %1437, %v357_v0   ;;  %v359_v2 = vmul.f32 %v357_v0, %v315_v40 }
 0x34f   :  { %v341_v3 = vmul.f32 %v1465_v57, %v340_v1 }
 0x350   :  { %364 = vrot.lane.b32.xlu2 %v359_v2, %s1839_s23 }
 0x351   :  { %v345_v5 = vsel %vm344_vm13, %v1465_v57, %v341_v3 }
 0x352   :  { %v356_v7 = vmul.f32 %v345_v5, %v1990_v6 }
 0x354   :  { %v358_v8 = vmul.f32 %v356_v7, %v314_v45 }
 0x356   :  { %362 = vrot.lane.b32.xlu0 %v358_v8, %s1839_s23  ;;  %1440 = vset.pattern.permute.xlu1 %v1843_v9 }
 0x35e   :  { %372 = vperm.xlu0 %1438, %v356_v7  }
 0x366   :  { %1443 = vset.pattern.permute.xlu0 %v1844_v22 }
 0x367   :  { %425 = vperm.xlu0 %1443, %v1981_v4  }
 0x3aa   :  { %v365_v10 = vpop.permute.xlu2 %364 }
 0x3ab   :  { %v369_v11 = vsub.f32 %v1981_v4, %v365_v10 }
 0x3ad   :  { %391 = vperm.xlu2 %1439, %v369_v11  }
 0x3b5   :  { %1441 = vset.pattern.permute.xlu2 %v1844_v22 }
 0x3b6   :  { %435 = vperm.xlu2 %1441, %v2069_v26  }
 0x3be   :  { %420 = vperm.xlu2 %1441, %v1990_v6  }
 0x3c0   :  { %v378_v14 = vpop.permute.xlu1 %377 }
 0x3c1   :  { %v382_v17 = vmul.f32 %v378_v14, %v2041_v29  ;;  %v383_v18 = vmul.f32 %v378_v14, %v2043_v30 }
 0x3c8   :  { %v363_v12 = vpop.permute.xlu0 %362 }
 0x3c9   :  { %v368_v13 = vsub.f32 %v1990_v6, %v363_v12 }
 0x3cb   :  { %386 = vperm.xlu1 %1440, %v368_v13  }
 0x3d0   :  { %v373_v25 = vpop.permute.xlu0 %372 }
 0x3d1   :  { %v380_v28 = vmul.f32 %v373_v25, %v2033_v23  ;;  %v381_v29 = vmul.f32 %v373_v25, %v2035_v24  ;;  %v411_v23 = vld [vmem:[%s2403_s29 + $0x8] sm:$0xff]  ;;  %v412_v24 = vld [vmem:[%s2403_s29 + $0x10] sm:$0xff]  ;;  %s1156_s29 = sshll.u32 %s2381_s8, 4  ;;  %s1157_s29 = int_to_ptr.hbm [resolvable:$true] %s1156_s29 }
 0x3d3   :  { %1442 = vset.pattern.permute.xlu1 %v1844_v22 }
 0x3d4   :  { %430 = vperm.xlu1 %1442, %v2074_v27  }
 0x3d9   :  { %v426_v43 = vpop.permute.xlu0 %425 }
 0x407   :  { %v392_v19 = vpop.permute.xlu2 %391 }
 0x408   :  { %v396_v20 = vadd.f32 %v392_v19, %v382_v17  ;;  %v397_v15 = vadd.f32 %v392_v19, %v383_v18 }
 0x40a   :  { %400 = vst [vmem:[#allocation11 + $0x10] sm:$0xff] %v396_v20  ;;  %v404_v16 = vmax.f32 %v396_v20, 0.0  ;;  %v405_v21 = vmax.f32 %v397_v15, 0.0 }
 0x40b   :  { %401 = vst [vmem:[#allocation11 + $0x18] sm:$0xff] %v397_v15 }
 0x40c   :  { %408 = vst [vmem:[#allocation12 + $0x10] sm:$0xff] %v404_v16  ;;  %464 = vmatpush.msra.mxu0 %v404_v16  ;;  %493 = vmatpush.msra.mxu1 %v405_v21 }
 0x40d   :  { %409 = vst [vmem:[#allocation12 + $0x18] sm:$0xff] %v405_v21 }
 0x410   :  { %v436_v37 = vpop.permute.xlu2 %435 }
 0x418   :  { %v421_v38 = vpop.permute.xlu2 %420 }
 0x43d   :  { %v387_v30 = vpop.permute.xlu1 %386 }
 0x43e   :  { %v394_v31 = vadd.f32 %v387_v30, %v380_v28  ;;  %v395_v32 = vadd.f32 %v387_v30, %v381_v29  ;;  %v1845_v29 = vmov 7  }
 0x43f   :  { %1444 = vset.pattern.permute.xlu1 %v1845_v29  ;;  %1445 = vset.pattern.permute.xlu2 %v1845_v29 }
 0x440   :  { %398 = vst [vmem:[#allocation11] sm:$0xff] %v394_v31  ;;  %v402_v33 = vmax.f32 %v394_v31, 0.0  ;;  %v403_v34 = vmax.f32 %v395_v32, 0.0 }
 0x441   :  { %399 = vst [vmem:[#allocation11 + $0x8] sm:$0xff] %v395_v32 }
 0x442   :  { %406 = vst [vmem:[#allocation12] sm:$0xff] %v402_v33  ;;  %465 = vmatpush.msra.mxu0 %v402_v33  ;;  %494 = vmatpush.msra.mxu1 %v403_v34 }
 0x443   :  { %407 = vst [vmem:[#allocation12 + $0x8] sm:$0xff] %v403_v34  ;;  %1374 = vmatmul.msk.f32.vlgmr.msra.gmra.mxu0 %vm251_vm7, %v410_v35  ;;  %1378 = vmatmul.msk.f32.vlgmr.msra.gmra.mxu1 %vm251_vm7, %v410_v35 }
 0x446   :  { %v431_v49 = vpop.permute.xlu1 %430 }
 0x44b   :  { %1375 = vmatmul.msk.f32.gmra.mxu0 %vm251_vm7, %v411_v23  ;;  %1379 = vmatmul.msk.f32.gmra.mxu1 %vm251_vm7, %v411_v23 }
 0x453   :  { %1376 = vmatmul.msk.f32.gmra.mxu0 %vm251_vm7, %v412_v24  ;;  %1380 = vmatmul.msk.f32.gmra.mxu1 %vm251_vm7, %v412_v24 }
 0x45b   :  { %1377 = vmatmul.msk.f32.gmra.mxu0 %vm251_vm7, %v413_v36  ;;  %1381 = vmatmul.msk.f32.gmra.mxu1 %vm251_vm7, %v413_v36 }
 0x4c0   :  { %v467_v39 = vpop.f32.mrf.mxu0  ;;  %v496_v40 = vpop.f32.mrf.mxu1 }
 0x4c1   :  { %v2101_v41 = vadd.f32 %v467_v39, %v421_v38  ;;  %v2103_v42 = vadd.f32 %v496_v40, %v421_v38 }
 0x4c3   :  { %508 = vst [vmem:[#allocation14] sm:$0xff] %v2101_v41  ;;  %v532_v2 = vmul.f32 %v2101_v41, %v2101_v41  ;;  %v533_v3 = vmul.f32 %v2103_v42, %v2103_v42  ;;  %v516_v8 = vadd.f32 %v2103_v42, %v2101_v41 }
 0x4c4   :  { %509 = vst [vmem:[#allocation14 + $0x8] sm:$0xff] %v2103_v42 }
 0x4c5   :  { %v540_v9 = vadd.f32 %v533_v3, %v532_v2 }
 0x4c8   :  { %v470_v44 = vpop.f32.mrf.mxu0  ;;  %v499_v45 = vpop.f32.mrf.mxu1 }
 0x4c9   :  { %v2107_v46 = vadd.f32 %v470_v44, %v426_v43  ;;  %v2109_v47 = vadd.f32 %v499_v45, %v426_v43 }
 0x4cb   :  { %510 = vst [vmem:[#allocation14 + $0x10] sm:$0xff] %v2107_v46  ;;  %v519_v48 = vadd.f32 %v2109_v47, %v2107_v46  ;;  %v534_v5 = vmul.f32 %v2107_v46, %v2107_v46  ;;  %v535_v7 = vmul.f32 %v2109_v47, %v2109_v47 }
 0x4cc   :  { %511 = vst [vmem:[#allocation14 + $0x18] sm:$0xff] %v2109_v47 }
 0x4cd   :  { %520 = vadd.xlane.f32.xlu1 %v519_v48  ;;  %v543_v10 = vadd.f32 %v535_v7, %v534_v5 }
 0x4d0   :  { %v473_v50 = vpop.f32.mrf.mxu0  ;;  %v502_v51 = vpop.f32.mrf.mxu1 }
 0x4d1   :  { %v2115_v52 = vadd.f32 %v473_v50, %v431_v49  ;;  %v2117_v53 = vadd.f32 %v502_v51, %v431_v49 }
 0x4d3   :  { %512 = vst [vmem:[#allocation14 + $0x20] sm:$0xff] %v2115_v52  ;;  %v522_v54 = vadd.f32 %v2117_v53, %v2115_v52  ;;  %v536_v55 = vmul.f32 %v2115_v52, %v2115_v52  ;;  %v537_v56 = vmul.f32 %v2117_v53, %v2117_v53 }
 0x4d4   :  { %513 = vst [vmem:[#allocation14 + $0x28] sm:$0xff] %v2117_v53 }
 0x4d5   :  { %523 = vadd.xlane.f32.xlu2 %v522_v54  ;;  %v546_v62 = vadd.f32 %v537_v56, %v536_v55 }
 0x4d8   :  { %v476_v57 = vpop.f32.mrf.mxu0  ;;  %v505_v58 = vpop.f32.mrf.mxu1 }
 0x4d9   :  { %v2127_v59 = vadd.f32 %v476_v57, %v436_v37  ;;  %v2129_v60 = vadd.f32 %v505_v58, %v436_v37 }
 0x4db   :  { %514 = vst [vmem:[#allocation14 + $0x30] sm:$0xff] %v2127_v59  ;;  %v525_v61 = vadd.f32 %v2129_v60, %v2127_v59  ;;  %v538_v63 = vmul.f32 %v2127_v59, %v2127_v59  ;;  %v539_v0 = vmul.f32 %v2129_v60, %v2129_v60 }
 0x4dc   :  { %515 = vst [vmem:[#allocation14 + $0x38] sm:$0xff] %v2129_v60 }
 0x4dd   :  { %526 = vadd.xlane.f32.xlu1 %v525_v61  ;;  %547 = vadd.xlane.f32.xlu2 %v546_v62  ;;  %v549_v1 = vadd.f32 %v539_v0, %v538_v63 }
 0x4df   :  { %550 = vadd.xlane.f32.xlu0 %v549_v1 }
 0x4e5   :  { %517 = vadd.xlane.f32.xlu1 %v516_v8  ;;  %541 = vadd.xlane.f32.xlu2 %v540_v9 }
 0x4e7   :  { %544 = vadd.xlane.f32.xlu0 %v543_v10 }
 0x540   :  { %v521_v11 = vpop.xlane.xlu1 %520 }
 0x541   :  { %v2149_v30 = vmul.f32 0.00390625, %v521_v11 }
 0x543   :  { %v557_v23 = vmul.f32 %v2149_v30, %v2149_v30 }
 0x548   :  { %v524_v12 = vpop.xlane.xlu2 %523 }
 0x549   :  { %v530_v13 = vmul.f32 0.00390625, %v524_v12 }
 0x54b   :  { %v558_v18 = vmul.f32 %v530_v13, %v530_v13 }
 0x550   :  { %v548_v14 = vpop.xlane.xlu2 %547  ;;  %v527_v17 = vpop.xlane.xlu1 %526 }
 0x551   :  { %v554_v19 = vmul.f32 0.00390625, %v548_v14  ;;  %v531_v20 = vmul.f32 0.00390625, %v527_v17 }
 0x552   :  { %v551_v15 = vpop.xlane.xlu0 %550 }
 0x553   :  { %v562_v16 = vsub.f32 %v554_v19, %v558_v18  ;;  %v559_v21 = vmul.f32 %v531_v20, %v531_v20  ;;  %v555_v22 = vmul.f32 0.00390625, %v551_v15 }
 0x555   :  { %v570_v25 = vadd.f32 1e-05, %v562_v16  ;;  %v563_v28 = vsub.f32 %v555_v22, %v559_v21 }
 0x557   :  { %1466 = vrsqrt.f32 %v570_v25  ;;  %v571_v31 = vadd.f32 1e-05, %v563_v28  ;;  %vm598_vm15 = vweird.f32 %v570_v25  ;;  %v1846_v28 = vmov 11  }
 0x558   :  { %v542_v32 = vpop.xlane.xlu2 %541  ;;  %v518_v33 = vpop.xlane.xlu1 %517  ;;  %1447 = vset.pattern.permute.xlu0 %v1846_v28 }
 0x559   :  { %1468 = vrsqrt.f32 %v571_v31  ;;  %v528_v34 = vmul.f32 0.00390625, %v518_v33  ;;  %v552_v24 = vmul.f32 0.00390625, %v542_v32  ;;  %vm608_vm2 = vweird.f32 %v571_v31 }
 0x55a   :  { %v545_v35 = vpop.xlane.xlu0 %544 }
 0x55b   :  { %v556_v36 = vmul.f32 %v528_v34, %v528_v34  ;;  %v553_v37 = vmul.f32 0.00390625, %v545_v35 }
 0x55d   :  { %v1467_v38 = vpop.eup %1466  ;;  %v560_v39 = vsub.f32 %v552_v24, %v556_v36  ;;  %v561_v40 = vsub.f32 %v553_v37, %v557_v23 }
 0x55e   :  { %v593_v43 = vmul.f32 %v1467_v38, %v570_v25  ;;  %vm599_vm14 = vweird.f32 %v1467_v38 }
 0x55f   :  { %v1469_v44 = vpop.eup %1468  ;;  %v568_v45 = vadd.f32 1e-05, %v560_v39  ;;  %v569_v48 = vadd.f32 1e-05, %v561_v40  ;;  %vm600_vm1 = vmor %vm598_vm15, %vm599_vm14 }
 0x560   :  { %v594_v49 = vmul.f32 %v1467_v38, %v593_v43  ;;  %v603_v50 = vmul.f32 %v1469_v44, %v571_v31  ;;  %vm609_vm0 = vweird.f32 %v1469_v44 }
 0x561   :  { %1470 = vrsqrt.f32 %v568_v45  ;;  %vm610_vm3 = vmor %vm608_vm2, %vm609_vm0  ;;  %vm578_vm6 = vweird.f32 %v568_v45  ;;  %vm588_vm8 = vweird.f32 %v569_v48 }
 0x562   :  { %v595_v51 = vmul.f32 0.5, %v594_v49  ;;  %v604_v54 = vmul.f32 %v1469_v44, %v603_v50  ;;  %1472 = vrsqrt.f32 %v569_v48 }
 0x564   :  { %v596_v55 = vsub.f32 1.5, %v595_v51  ;;  %v605_v56 = vmul.f32 0.5, %v604_v54 }
 0x566   :  { %v606_v57 = vsub.f32 1.5, %v605_v56  ;;  %v597_v58 = vmul.f32 %v1467_v38, %v596_v55 }
 0x567   :  { %v1471_v61 = vpop.eup %1470 }
 0x568   :  { %v1473_v62 = vpop.eup %1472  ;;  %v573_v63 = vmul.f32 %v1471_v61, %v568_v45  ;;  %v601_v0 = vsel %vm600_vm1, %v1467_v38, %v597_v58  ;;  %v607_v1 = vmul.f32 %v1469_v44, %v606_v57  ;;  %vm579_vm4 = vweird.f32 %v1471_v61 }
 0x569   :  { %v583_v2 = vmul.f32 %v1473_v62, %v569_v48  ;;  %v614_v3 = vmul.f32 %v601_v0, %v2074_v27  ;;  %vm589_vm5 = vweird.f32 %v1473_v62  ;;  %vm580_vm7 = vmor %vm578_vm6, %vm579_vm4 }
 0x56a   :  { %v574_v5 = vmul.f32 %v1471_v61, %v573_v63  ;;  %v611_v7 = vsel %vm610_vm3, %v1469_v44, %v607_v1  ;;  %vm590_vm9 = vmor %vm588_vm8, %vm589_vm5 }
 0x56b   :  { %v584_v8 = vmul.f32 %v1473_v62, %v583_v2  ;;  %v618_v9 = vmul.f32 %v614_v3, %v530_v13  ;;  %v615_v10 = vmul.f32 %v611_v7, %v2069_v26  ;;  %v723_v7 = vld [vmem:[%s2377_s4 + $0x18] sm:$0xff] }
 0x56c   :  { %v575_v11 = vmul.f32 0.5, %v574_v5  ;;  %v720_v5 = vld [vmem:[%s2377_s4] sm:$0xff] }
 0x56d   :  { %v585_v12 = vmul.f32 0.5, %v584_v8  ;;  %628 = vrot.lane.b32.xlu0 %v618_v9, %s1839_s23  ;;  %v619_v14 = vmul.f32 %v615_v10, %v531_v20 }
 0x56e   :  { %v576_v17 = vsub.f32 1.5, %v575_v11 }
 0x56f   :  { %v586_v18 = vsub.f32 1.5, %v585_v12  ;;  %630 = vrot.lane.b32.xlu1 %v619_v14, %s1839_s23 }
 0x570   :  { %v577_v19 = vmul.f32 %v1471_v61, %v576_v17 }
 0x571   :  { %v587_v15 = vmul.f32 %v1473_v62, %v586_v18 }
 0x572   :  { %v581_v16 = vsel %vm580_vm7, %v1471_v61, %v577_v19 }
 0x573   :  { %v612_v13 = vmul.f32 %v581_v16, %v1990_v6  ;;  %v591_v21 = vsel %vm590_vm9, %v1473_v62, %v587_v15 }
 0x574   :  { %v613_v22 = vmul.f32 %v591_v21, %v1981_v4 }
 0x575   :  { %v616_v25 = vmul.f32 %v612_v13, %v528_v34 }
 0x576   :  { %v617_v20 = vmul.f32 %v613_v22, %v2149_v30 }
 0x577   :  { %657 = vperm.xlu1 %1444, %v615_v10   ;;  %624 = vrot.lane.b32.xlu0 %v616_v25, %s1839_s23 }
 0x578   :  { %626 = vrot.lane.b32.xlu2 %v617_v20, %s1839_s23 }
 0x57f   :  { %647 = vperm.xlu1 %1444, %v613_v22  }
 0x580   :  { %652 = vperm.xlu2 %1445, %v614_v3  }
 0x587   :  { %642 = vperm.xlu1 %1444, %v612_v13  }
 0x588   :  { %1446 = vset.pattern.permute.xlu2 %v1846_v28 }
 0x5d2   :  { %v627_v30 = vpop.permute.xlu2 %626 }
 0x5d3   :  { %v637_v34 = vsub.f32 %v1981_v4, %v627_v30 }
 0x5da   :  { %v653_v24 = vpop.permute.xlu2 %652 }
 0x5db   :  { %v664_v37 = vmul.f32 %v653_v24, %v2115_v52  ;;  %v665_v38 = vmul.f32 %v653_v24, %v2117_v53  ;;  %v1847_v52 = vmov 3  }
 0x5dc   :  { %1448 = vset.pattern.permute.xlu1 %v1847_v52 }
 0x5dd   :  { %745 = vperm.xlu1 %1448, %v2069_v26  }
 0x5df   :  { %v629_v29 = vpop.permute.xlu0 %628 }
 0x5e0   :  { %v638_v31 = vsub.f32 %v2074_v27, %v629_v29 }
 0x5e1   :  { %v631_v32 = vpop.permute.xlu1 %630 }
 0x5e2   :  { %v639_v33 = vsub.f32 %v2069_v26, %v631_v32  ;;  %680 = vperm.xlu2 %1446, %v638_v31  }
 0x5e4   :  { %685 = vperm.xlu0 %1447, %v639_v33  }
 0x5e5   :  { %730 = vperm.xlu1 %1448, %v1990_v6  }
 0x5e9   :  { %v625_v35 = vpop.permute.xlu0 %624  ;;  %v658_v36 = vpop.permute.xlu1 %657 }
 0x5ea   :  { %v636_v23 = vsub.f32 %v1990_v6, %v625_v35  ;;  %675 = vperm.xlu2 %1446, %v637_v34  }
 0x5ec   :  { %670 = vperm.xlu0 %1447, %v636_v23  }
 0x5f1   :  { %v648_v48 = vpop.permute.xlu1 %647 }
 0x5f2   :  { %v662_v49 = vmul.f32 %v648_v48, %v2107_v46  ;;  %v663_v50 = vmul.f32 %v648_v48, %v2109_v47  ;;  %1449 = vset.pattern.permute.xlu2 %v1847_v52  ;;  %v666_v46 = vmul.f32 %v658_v36, %v2127_v59  ;;  %v667_v47 = vmul.f32 %v658_v36, %v2129_v60 }
 0x5f3   :  { %740 = vperm.xlu2 %1449, %v2074_v27  }
 0x5f4   :  { %1450 = vset.pattern.permute.xlu0 %v1847_v52 }
 0x5f5   :  { %735 = vperm.xlu0 %1450, %v1981_v4  }
 0x5f9   :  { %v643_v63 = vpop.permute.xlu1 %642 }
 0x5fa   :  { %v660_v0 = vmul.f32 %v643_v63, %v2101_v41  ;;  %v661_v6 = vmul.f32 %v643_v63, %v2103_v42  ;;  %v721_v41 = vld [vmem:[%s2377_s4 + $0x8] sm:$0xff]  ;;  %v722_v42 = vld [vmem:[%s2377_s4 + $0x10] sm:$0xff]  ;;  %s1852_s4 = smov 256  }
 0x5fb   :  { %1162 = dma.vmem_to_hbm [thread:$0]  %s1155_s26, 512, %s1157_s29, [#allocation7], %s1852_s4, %s1852_s4, %s1853_s0  }
 0x5fc   :  { %1214 = dma.vmem_to_hbm [thread:$0]  %s1207_s2, 512, %s1209_s1, [#allocation13], %s1852_s4, %s1852_s4, %s1853_s0  }
 0x5fd   :  { %s1234_s26 = sshll.u32 %s2387_s14, 4  ;;  %s1857_s29 = smov [#allocation18]   ;;  %s1235_s26 = int_to_ptr.hbm [resolvable:$true] %s1234_s26 }
 0x5fe   :  { %s1859_s1 = smov [#allocation5]   ;;  %s1860_s2 = smov [#allocation8]  }
 0x5ff   :  { %s1141_s22 = sshll.u32 %s1859_s1, 4  ;;  %s1273_s1 = sshll.u32 %s2390_s17, 4  ;;  %s1142_s22 = int_to_ptr.vmem [resolvable:$true] %s1141_s22  ;;  %s1274_s1 = int_to_ptr.hbm [resolvable:$true] %s1273_s1 }
 0x600   :  { %1149 = dma.vmem_to_hbm [thread:$0]  %s1142_s22, 512, %s1144_s21, [#allocation4], %s1852_s4, %s1852_s4, %s1853_s0  }
 0x601   :  { %s1297_s17 = sshll.u32 %s1865_s15, 4  ;;  %s1298_s17 = int_to_ptr.vmem [resolvable:$true] %s1297_s17 }
 0x63c   :  { %v681_v39 = vpop.permute.xlu2 %680 }
 0x63d   :  { %v692_v40 = vadd.f32 %v681_v39, %v664_v37  ;;  %v693_v43 = vadd.f32 %v681_v39, %v665_v38 }
 0x63f   :  { %700 = vst [vmem:[#allocation15 + $0x20] sm:$0xff] %v692_v40  ;;  %v708_v44 = vmax.f32 %v692_v40, 0.0  ;;  %v709_v45 = vmax.f32 %v693_v43, 0.0 }
 0x640   :  { %701 = vst [vmem:[#allocation15 + $0x28] sm:$0xff] %v693_v43 }
 0x641   :  { %716 = vst [vmem:[#allocation17 + $0x20] sm:$0xff] %v708_v44 }
 0x642   :  { %717 = vst [vmem:[#allocation17 + $0x28] sm:$0xff] %v709_v45 }
 0x644   :  { %v676_v51 = vpop.permute.xlu2 %675 }
 0x645   :  { %v690_v54 = vadd.f32 %v676_v51, %v662_v49  ;;  %v691_v55 = vadd.f32 %v676_v51, %v663_v50 }
 0x647   :  { %698 = vst [vmem:[#allocation15 + $0x10] sm:$0xff] %v690_v54  ;;  %v706_v53 = vmax.f32 %v690_v54, 0.0  ;;  %v707_v56 = vmax.f32 %v691_v55, 0.0 }
 0x648   :  { %699 = vst [vmem:[#allocation15 + $0x18] sm:$0xff] %v691_v55 }
 0x649   :  { %714 = vst [vmem:[#allocation17 + $0x10] sm:$0xff] %v706_v53 }
 0x64a   :  { %715 = vst [vmem:[#allocation17 + $0x18] sm:$0xff] %v707_v56 }
 0x64d   :  { %v741_v21 = vpop.permute.xlu2 %740 }
 0x64f   :  { %v746_v8 = vpop.permute.xlu1 %745 }
 0x656   :  { %v686_v57 = vpop.permute.xlu0 %685 }
 0x657   :  { %v694_v58 = vadd.f32 %v686_v57, %v666_v46  ;;  %v695_v61 = vadd.f32 %v686_v57, %v667_v47  ;;  %v731_v9 = vpop.permute.xlu1 %730 }
 0x659   :  { %702 = vst [vmem:[#allocation15 + $0x30] sm:$0xff] %v694_v58  ;;  %v710_v4 = vmax.f32 %v694_v58, 0.0  ;;  %v711_v62 = vmax.f32 %v695_v61, 0.0 }
 0x65a   :  { %703 = vst [vmem:[#allocation15 + $0x38] sm:$0xff] %v695_v61 }
 0x65b   :  { %718 = vst [vmem:[#allocation17 + $0x30] sm:$0xff] %v710_v4  ;;  %773 = vmatpush.msra.mxu2 %v710_v4  ;;  %802 = vmatpush.msra.mxu3 %v711_v62 }
 0x65c   :  { %719 = vst [vmem:[#allocation17 + $0x38] sm:$0xff] %v711_v62 }
 0x65d   :  { %774 = vmatpush.msra.mxu2 %v708_v44  ;;  %803 = vmatpush.msra.mxu3 %v709_v45 }
 0x65e   :  { %v671_v59 = vpop.permute.xlu0 %670 }
 0x65f   :  { %v688_v60 = vadd.f32 %v671_v59, %v660_v0  ;;  %v689_v1 = vadd.f32 %v671_v59, %v661_v6  ;;  %775 = vmatpush.msra.mxu2 %v706_v53  ;;  %804 = vmatpush.msra.mxu3 %v707_v56  ;;  %v1848_v53 = vmov 8  }
 0x660   :  { %1451 = vset.pattern.permute.xlu2 %v1848_v53  ;;  %1452 = vset.pattern.permute.xlu0 %v1848_v53 }
 0x661   :  { %696 = vst [vmem:[#allocation15] sm:$0xff] %v688_v60  ;;  %v704_v2 = vmax.f32 %v688_v60, 0.0  ;;  %v705_v3 = vmax.f32 %v689_v1, 0.0 }
 0x662   :  { %697 = vst [vmem:[#allocation15 + $0x8] sm:$0xff] %v689_v1 }
 0x663   :  { %712 = vst [vmem:[#allocation17] sm:$0xff] %v704_v2  ;;  %776 = vmatpush.msra.mxu2 %v704_v2  ;;  %805 = vmatpush.msra.mxu3 %v705_v3 }
 0x664   :  { %713 = vst [vmem:[#allocation17 + $0x8] sm:$0xff] %v705_v3  ;;  %1382 = vmatmul.msk.f32.vlgmr.msra.gmra.mxu2 %vm748_vm10, %v720_v5  ;;  %1386 = vmatmul.msk.f32.vlgmr.msra.gmra.mxu3 %vm748_vm10, %v720_v5 }
 0x667   :  { %v736_v17 = vpop.permute.xlu0 %735 }
 0x66c   :  { %1383 = vmatmul.msk.f32.gmra.mxu2 %vm748_vm10, %v721_v41  ;;  %1387 = vmatmul.msk.f32.gmra.mxu3 %vm748_vm10, %v721_v41 }
 0x674   :  { %1384 = vmatmul.msk.f32.gmra.mxu2 %vm748_vm10, %v722_v42  ;;  %1388 = vmatmul.msk.f32.gmra.mxu3 %vm748_vm10, %v722_v42 }
 0x67c   :  { %1385 = vmatmul.msk.f32.gmra.mxu2 %vm748_vm10, %v723_v7  ;;  %1389 = vmatmul.msk.f32.gmra.mxu3 %vm748_vm10, %v723_v7 }
 0x6e7   :  { %v778_v10 = vpop.f32.mrf.mxu2  ;;  %v807_v11 = vpop.f32.mrf.mxu3 }
 0x6e8   :  { %v2198_v12 = vadd.f32 %v778_v10, %v731_v9  ;;  %v2200_v14 = vadd.f32 %v807_v11, %v731_v9 }
 0x6ea   :  { %819 = vst [vmem:[#allocation18] sm:$0xff] %v2198_v12  ;;  %v843_v39 = vmul.f32 %v2198_v12, %v2198_v12  ;;  %v844_v40 = vmul.f32 %v2200_v14, %v2200_v14  ;;  %v827_v48 = vadd.f32 %v2200_v14, %v2198_v12 }
 0x6eb   :  { %820 = vst [vmem:[#allocation18 + $0x8] sm:$0xff] %v2200_v14 }
 0x6ec   :  { %v851_v45 = vadd.f32 %v844_v40, %v843_v39 }
 0x6ef   :  { %v781_v18 = vpop.f32.mrf.mxu2  ;;  %v810_v19 = vpop.f32.mrf.mxu3 }
 0x6f0   :  { %v2204_v15 = vadd.f32 %v781_v18, %v736_v17  ;;  %v2206_v16 = vadd.f32 %v810_v19, %v736_v17 }
 0x6f2   :  { %821 = vst [vmem:[#allocation18 + $0x10] sm:$0xff] %v2204_v15  ;;  %v830_v13 = vadd.f32 %v2206_v16, %v2204_v15  ;;  %v845_v43 = vmul.f32 %v2204_v15, %v2204_v15  ;;  %v846_v44 = vmul.f32 %v2206_v16, %v2206_v16 }
 0x6f3   :  { %822 = vst [vmem:[#allocation18 + $0x18] sm:$0xff] %v2206_v16 }
 0x6f4   :  { %831 = vadd.xlane.f32.xlu2 %v830_v13  ;;  %v854_v49 = vadd.f32 %v846_v44, %v845_v43 }
 0x6f7   :  { %v784_v22 = vpop.f32.mrf.mxu2  ;;  %v813_v25 = vpop.f32.mrf.mxu3 }
 0x6f8   :  { %v2212_v20 = vadd.f32 %v784_v22, %v741_v21  ;;  %v2214_v28 = vadd.f32 %v813_v25, %v741_v21 }
 0x6fa   :  { %823 = vst [vmem:[#allocation18 + $0x20] sm:$0xff] %v2212_v20  ;;  %v833_v29 = vadd.f32 %v2214_v28, %v2212_v20  ;;  %v847_v31 = vmul.f32 %v2212_v20, %v2212_v20  ;;  %v848_v32 = vmul.f32 %v2214_v28, %v2214_v28 }
 0x6fb   :  { %824 = vst [vmem:[#allocation18 + $0x28] sm:$0xff] %v2214_v28 }
 0x6fc   :  { %834 = vadd.xlane.f32.xlu1 %v833_v29  ;;  %v857_v23 = vadd.f32 %v848_v32, %v847_v31 }
 0x6ff   :  { %v787_v33 = vpop.f32.mrf.mxu2  ;;  %v816_v30 = vpop.f32.mrf.mxu3 }
 0x700   :  { %v2224_v34 = vadd.f32 %v787_v33, %v746_v8  ;;  %v2226_v35 = vadd.f32 %v816_v30, %v746_v8 }
 0x702   :  { %825 = vst [vmem:[#allocation18 + $0x30] sm:$0xff] %v2224_v34  ;;  %v836_v24 = vadd.f32 %v2226_v35, %v2224_v34  ;;  %v849_v36 = vmul.f32 %v2224_v34, %v2224_v34  ;;  %v850_v37 = vmul.f32 %v2226_v35, %v2226_v35 }
 0x703   :  { %826 = vst [vmem:[#allocation18 + $0x38] sm:$0xff] %v2226_v35 }
 0x704   :  { %858 = vadd.xlane.f32.xlu1 %v857_v23  ;;  %837 = vadd.xlane.f32.xlu2 %v836_v24  ;;  %v860_v38 = vadd.f32 %v850_v37, %v849_v36 }
 0x706   :  { %861 = vadd.xlane.f32.xlu0 %v860_v38 }
 0x70c   :  { %852 = vadd.xlane.f32.xlu1 %v851_v45  ;;  %828 = vadd.xlane.f32.xlu2 %v827_v48 }
 0x70e   :  { %855 = vadd.xlane.f32.xlu0 %v854_v49 }
 0x767   :  { %v832_v50 = vpop.xlane.xlu2 %831 }
 0x768   :  { %v2246_v0 = vmul.f32 0.00390625, %v832_v50 }
 0x76a   :  { %v868_v3 = vmul.f32 %v2246_v0, %v2246_v0 }
 0x76f   :  { %v835_v51 = vpop.xlane.xlu1 %834 }
 0x770   :  { %v841_v54 = vmul.f32 0.00390625, %v835_v51 }
 0x772   :  { %v869_v56 = vmul.f32 %v841_v54, %v841_v54 }
 0x777   :  { %v838_v55 = vpop.xlane.xlu2 %837  ;;  %v859_v52 = vpop.xlane.xlu1 %858 }
 0x778   :  { %v842_v46 = vmul.f32 0.00390625, %v838_v55  ;;  %v865_v47 = vmul.f32 0.00390625, %v859_v52  ;;  %v875_v52 = vld [vmem:[%s2379_s6] sm:$0xff] }
 0x779   :  { %v862_v57 = vpop.xlane.xlu0 %861 }
 0x77a   :  { %v870_v58 = vmul.f32 %v842_v46, %v842_v46  ;;  %v873_v61 = vsub.f32 %v865_v47, %v869_v56  ;;  %v866_v4 = vmul.f32 0.00390625, %v862_v57 }
 0x77c   :  { %v881_v62 = vadd.f32 1e-05, %v873_v61  ;;  %v874_v63 = vsub.f32 %v866_v4, %v870_v58 }
 0x77e   :  { %1474 = vrsqrt.f32 %v881_v62  ;;  %v882_v6 = vadd.f32 1e-05, %v874_v63  ;;  %vm909_vm12 = vweird.f32 %v881_v62 }
 0x77f   :  { %v829_v59 = vpop.xlane.xlu2 %828  ;;  %v853_v60 = vpop.xlane.xlu1 %852 }
 0x780   :  { %1476 = vrsqrt.f32 %v882_v6  ;;  %v839_v1 = vmul.f32 0.00390625, %v829_v59  ;;  %v863_v41 = vmul.f32 0.00390625, %v853_v60  ;;  %vm919_vm15 = vweird.f32 %v882_v6 }
 0x781   :  { %v856_v2 = vpop.xlane.xlu0 %855 }
 0x782   :  { %v867_v5 = vmul.f32 %v839_v1, %v839_v1  ;;  %v864_v42 = vmul.f32 0.00390625, %v856_v2 }
 0x784   :  { %v1475_v7 = vpop.eup %1474  ;;  %v871_v8 = vsub.f32 %v863_v41, %v867_v5  ;;  %v872_v9 = vsub.f32 %v864_v42, %v868_v3 }
 0x785   :  { %v904_v10 = vmul.f32 %v1475_v7, %v881_v62  ;;  %vm910_vm11 = vweird.f32 %v1475_v7  ;;  %v1849_v62 = vmov 12  }
 0x786   :  { %v1477_v11 = vpop.eup %1476  ;;  %v879_v17 = vadd.f32 1e-05, %v871_v8  ;;  %v880_v18 = vadd.f32 1e-05, %v872_v9  ;;  %vm911_vm14 = vmor %vm909_vm12, %vm910_vm11  ;;  %1454 = vset.pattern.permute.xlu1 %v1849_v62 }
 0x787   :  { %v905_v19 = vmul.f32 %v1475_v7, %v904_v10  ;;  %v914_v13 = vmul.f32 %v1477_v11, %v882_v6  ;;  %vm920_vm13 = vweird.f32 %v1477_v11 }
 0x788   :  { %1478 = vrsqrt.f32 %v879_v17  ;;  %vm921_vm0 = vmor %vm919_vm15, %vm920_vm13  ;;  %vm889_vm3 = vweird.f32 %v879_v17  ;;  %vm899_vm5 = vweird.f32 %v880_v18 }
 0x789   :  { %v906_v21 = vmul.f32 0.5, %v905_v19  ;;  %v915_v22 = vmul.f32 %v1477_v11, %v914_v13  ;;  %1480 = vrsqrt.f32 %v880_v18 }
 0x78b   :  { %v907_v25 = vsub.f32 1.5, %v906_v21  ;;  %v916_v29 = vmul.f32 0.5, %v915_v22  ;;  %v1850_v21 = vmov 4  }
 0x78d   :  { %v917_v31 = vsub.f32 1.5, %v916_v29  ;;  %v908_v32 = vmul.f32 %v1475_v7, %v907_v25 }
 0x78e   :  { %v1479_v33 = vpop.eup %1478 }
 0x78f   :  { %v1481_v30 = vpop.eup %1480  ;;  %v884_v23 = vmul.f32 %v1479_v33, %v879_v17  ;;  %v912_v24 = vsel %vm911_vm14, %v1475_v7, %v908_v32  ;;  %v918_v36 = vmul.f32 %v1477_v11, %v917_v31  ;;  %vm890_vm1 = vweird.f32 %v1479_v33 }
 0x790   :  { %v894_v37 = vmul.f32 %v1481_v30, %v880_v18  ;;  %v925_v38 = vmul.f32 %v912_v24, %v2074_v27  ;;  %vm900_vm2 = vweird.f32 %v1481_v30  ;;  %vm891_vm4 = vmor %vm889_vm3, %vm890_vm1 }
 0x791   :  { %v885_v39 = vmul.f32 %v1479_v33, %v884_v23  ;;  %v922_v40 = vsel %vm921_vm0, %v1477_v11, %v918_v36  ;;  %vm901_vm6 = vmor %vm899_vm5, %vm900_vm2 }
 0x792   :  { %v895_v43 = vmul.f32 %v1481_v30, %v894_v37  ;;  %v929_v44 = vmul.f32 %v925_v38, %v841_v54  ;;  %v926_v45 = vmul.f32 %v922_v40, %v2069_v26  ;;  %v876_v54 = vld [vmem:[%s2379_s6 + $0x8] sm:$0xff]  ;;  %v1034_v40 = vld [vmem:[%s2378_s5 + $0x18] sm:$0xff]  ;;  %s1863_s6 = smov [#allocation17]  }
 0x793   :  { %v886_v48 = vmul.f32 0.5, %v885_v39 }
 0x794   :  { %v896_v49 = vmul.f32 0.5, %v895_v43  ;;  %939 = vrot.lane.b32.xlu0 %v929_v44, %s1839_s23  ;;  %v930_v50 = vmul.f32 %v926_v45, %v842_v46 }
 0x795   :  { %v887_v51 = vsub.f32 1.5, %v886_v48 }
 0x796   :  { %v897_v55 = vsub.f32 1.5, %v896_v49  ;;  %941 = vrot.lane.b32.xlu2 %v930_v50, %s1839_s23 }
 0x797   :  { %v888_v53 = vmul.f32 %v1479_v33, %v887_v51 }
 0x798   :  { %v898_v56 = vmul.f32 %v1481_v30, %v897_v55 }
 0x799   :  { %v892_v46 = vsel %vm891_vm4, %v1479_v33, %v888_v53 }
 0x79a   :  { %v902_v47 = vsel %vm901_vm6, %v1481_v30, %v898_v56  ;;  %v923_v57 = vmul.f32 %v892_v46, %v875_v52 }
 0x79b   :  { %v924_v58 = vmul.f32 %v902_v47, %v876_v54 }
 0x79c   :  { %v927_v61 = vmul.f32 %v923_v57, %v839_v1 }
 0x79d   :  { %v928_v4 = vmul.f32 %v924_v58, %v2246_v0 }
 0x79e   :  { %968 = vperm.xlu2 %1451, %v926_v45   ;;  %935 = vrot.lane.b32.xlu0 %v927_v61, %s1839_s23 }
 0x79f   :  { %937 = vrot.lane.b32.xlu1 %v928_v4, %s1839_s23  ;;  %s1182_s23 = sshll.u32 %s2383_s10, 4  ;;  %s1232_s10 = sshll.u32 %s1856_s24, 4  ;;  %s1183_s23 = int_to_ptr.hbm [resolvable:$true] %s1182_s23  ;;  %s1233_s10 = int_to_ptr.vmem [resolvable:$true] %s1232_s10 }
 0x7a0   :  { %1240 = dma.vmem_to_hbm [thread:$0]  %s1233_s10, 1024, %s1235_s26, [#allocation16], %s1852_s4, %s1852_s4, %s1853_s0  }
 0x7a1   :  { %s1195_s26 = sshll.u32 %s2384_s11, 4  ;;  %s1196_s26 = int_to_ptr.hbm [resolvable:$true] %s1195_s26 }
 0x7a6   :  { %958 = vperm.xlu2 %1451, %v924_v58   ;;  %963 = vperm.xlu0 %1452, %v925_v38  }
 0x7ae   :  { %953 = vperm.xlu2 %1451, %v923_v57   ;;  %1453 = vset.pattern.permute.xlu0 %v1849_v62 }
 0x7b6   :  { %1455 = vset.pattern.permute.xlu2 %v1850_v21 }
 0x7b7   :  { %1041 = vperm.xlu2 %1455, %v875_v52  }
 0x7bf   :  { %1051 = vperm.xlu2 %1455, %v2074_v27  }
 0x7f0   :  { %v942_v59 = vpop.permute.xlu2 %941 }
 0x7f1   :  { %v950_v60 = vsub.f32 %v2069_v26, %v942_v59 }
 0x7f8   :  { %v969_v5 = vpop.permute.xlu2 %968 }
 0x7f9   :  { %v977_v19 = vmul.f32 %v969_v5, %v2224_v34  ;;  %v978_v13 = vmul.f32 %v969_v5, %v2226_v35 }
 0x800   :  { %v959_v11 = vpop.permute.xlu2 %958 }
 0x801   :  { %v973_v25 = vmul.f32 %v959_v11, %v2204_v15  ;;  %v974_v29 = vmul.f32 %v959_v11, %v2206_v16 }
 0x806   :  { %v940_v63 = vpop.permute.xlu0 %939 }
 0x807   :  { %v949_v6 = vsub.f32 %v2074_v27, %v940_v63  ;;  %v1032_v27 = vld [vmem:[%s2378_s5 + $0x8] sm:$0xff] }
 0x808   :  { %v954_v35 = vpop.permute.xlu2 %953 }
 0x809   :  { %991 = vperm.xlu1 %1454, %v949_v6   ;;  %v972_v15 = vmul.f32 %v954_v35, %v2200_v14  ;;  %v1033_v14 = vld [vmem:[%s2378_s5 + $0x10] sm:$0xff] }
 0x810   :  { %v936_v2 = vpop.permute.xlu0 %935 }
 0x811   :  { %v938_v1 = vpop.permute.xlu1 %937  ;;  %996 = vperm.xlu1 %1454, %v950_v60   ;;  %v947_v3 = vsub.f32 %v875_v52, %v936_v2  ;;  %v1042_v43 = vpop.permute.xlu2 %1041 }
 0x812   :  { %v948_v0 = vsub.f32 %v876_v54, %v938_v1 }
 0x814   :  { %986 = vperm.xlu0 %1453, %v948_v0  }
 0x818   :  { %v964_v41 = vpop.permute.xlu0 %963 }
 0x819   :  { %981 = vperm.xlu1 %1454, %v947_v3   ;;  %v975_v42 = vmul.f32 %v964_v41, %v2212_v20  ;;  %v976_v7 = vmul.f32 %v964_v41, %v2214_v28 }
 0x81c   :  { %1457 = vset.pattern.permute.xlu0 %v1850_v21 }
 0x81d   :  { %1056 = vperm.xlu0 %1457, %v2069_v26   ;;  %v971_v26 = vmul.f32 %v954_v35, %v2198_v12  ;;  %v1031_v12 = vld [vmem:[%s2378_s5] sm:$0xff]  ;;  %s1180_s5 = sshll.u32 %s1854_s30, 4  ;;  %s1258_s30 = sshll.u32 %s1857_s29, 4  ;;  %s1181_s5 = int_to_ptr.vmem [resolvable:$true] %s1180_s5  ;;  %s1259_s30 = int_to_ptr.vmem [resolvable:$true] %s1258_s30 }
 0x81e   :  { %1188 = dma.vmem_to_hbm [thread:$0]  %s1181_s5, 512, %s1183_s23, [#allocation10], %s1852_s4, %s1852_s4, %s1853_s0  }
 0x81f   :  { %1266 = dma.vmem_to_hbm [thread:$0]  %s1259_s30, 1024, %s1261_s28, [#allocation19], %s1852_s4, %s1852_s4, %s1853_s0  }
 0x820   :  { %s1858_s5 = smov [#allocation21]   ;;  %s1286_s23 = sshll.u32 %s2391_s18, 4  ;;  %s1287_s23 = int_to_ptr.hbm [resolvable:$true] %s1286_s23 }
 0x821   :  { %1456 = vset.pattern.permute.xlu1 %v1850_v21  ;;  %s1284_s14 = sshll.u32 %s1858_s5, 4  ;;  %s1167_s18 = sshll.u32 %s1860_s2, 4  ;;  %s1285_s14 = int_to_ptr.vmem [resolvable:$true] %s1284_s14  ;;  %s1168_s18 = int_to_ptr.vmem [resolvable:$true] %s1167_s18 }
 0x822   :  { %1046 = vperm.xlu1 %1456, %v876_v54   ;;  %1175 = dma.vmem_to_hbm [thread:$0]  %s1168_s18, 512, %s1170_s25, [#allocation7], %s1852_s4, %s1852_s4, %s1853_s0   ;;  %v1052_v54 = vpop.permute.xlu2 %1051 }
 0x823   :  { %1201 = dma.vmem_to_hbm [thread:$0]  %s1194_s27, 512, %s1196_s26, [#allocation10], %s1852_s4, %s1852_s4, %s1853_s0  }
 0x824   :  { %s1862_s28 = smov [#allocation14]   ;;  %s1221_s5 = sshll.u32 %s2386_s13, 4  ;;  %s1222_s5 = int_to_ptr.hbm [resolvable:$true] %s1221_s5 }
 0x825   :  { %s1219_s9 = sshll.u32 %s1862_s28, 4  ;;  %s1271_s13 = sshll.u32 %s1864_s16, 4  ;;  %s1220_s9 = int_to_ptr.vmem [resolvable:$true] %s1219_s9  ;;  %s1272_s13 = int_to_ptr.vmem [resolvable:$true] %s1271_s13 }
 0x826   :  { %1227 = dma.vmem_to_hbm [thread:$0]  %s1220_s9, 1024, %s1222_s5, [#allocation13], %s1852_s4, %s1852_s4, %s1853_s0  }
 0x827   :  { %s1299_s18 = sshll.u32 %s2392_s19, 4  ;;  %s1300_s18 = int_to_ptr.hbm [resolvable:$true] %s1299_s18 }
 0x87b   :  { %v992_v8 = vpop.permute.xlu1 %991 }
 0x87c   :  { %v1003_v9 = vadd.f32 %v992_v8, %v975_v42  ;;  %v1004_v10 = vadd.f32 %v992_v8, %v976_v7 }
 0x87e   :  { %1011 = vst [vmem:[#allocation20 + $0x20] sm:$0xff] %v1003_v9  ;;  %v1019_v17 = vmax.f32 %v1003_v9, 0.0  ;;  %v1020_v18 = vmax.f32 %v1004_v10, 0.0 }
 0x87f   :  { %1012 = vst [vmem:[#allocation20 + $0x28] sm:$0xff] %v1004_v10 }
 0x880   :  { %1027 = vst [vmem:[#allocation21 + $0x20] sm:$0xff] %v1019_v17 }
 0x881   :  { %1028 = vst [vmem:[#allocation21 + $0x28] sm:$0xff] %v1020_v18 }
 0x883   :  { %v997_v20 = vpop.permute.xlu1 %996 }
 0x884   :  { %v1005_v28 = vadd.f32 %v997_v20, %v977_v19  ;;  %v1006_v22 = vadd.f32 %v997_v20, %v978_v13 }
 0x886   :  { %1013 = vst [vmem:[#allocation20 + $0x30] sm:$0xff] %v1005_v28  ;;  %v987_v31 = vpop.permute.xlu0 %986  ;;  %v1021_v34 = vmax.f32 %v1005_v28, 0.0  ;;  %v1022_v32 = vmax.f32 %v1006_v22, 0.0 }
 0x887   :  { %1014 = vst [vmem:[#allocation20 + $0x38] sm:$0xff] %v1006_v22  ;;  %v1001_v33 = vadd.f32 %v987_v31, %v973_v25  ;;  %v1002_v30 = vadd.f32 %v987_v31, %v974_v29 }
 0x888   :  { %1029 = vst [vmem:[#allocation21 + $0x30] sm:$0xff] %v1021_v34  ;;  %1083 = vmatpush.msrb.mxu0 %v1021_v34  ;;  %1112 = vmatpush.msrb.mxu1 %v1022_v32 }
 0x889   :  { %1009 = vst [vmem:[#allocation20 + $0x10] sm:$0xff] %v1001_v33  ;;  %v1017_v23 = vmax.f32 %v1001_v33, 0.0  ;;  %v1018_v24 = vmax.f32 %v1002_v30, 0.0 }
 0x88a   :  { %1010 = vst [vmem:[#allocation20 + $0x18] sm:$0xff] %v1002_v30  ;;  %1084 = vmatpush.msrb.mxu0 %v1019_v17  ;;  %1113 = vmatpush.msrb.mxu1 %v1020_v18 }
 0x88b   :  { %1030 = vst [vmem:[#allocation21 + $0x38] sm:$0xff] %v1022_v32  ;;  %v982_v16 = vpop.permute.xlu1 %981 }
 0x88c   :  { %v999_v36 = vadd.f32 %v982_v16, %v971_v26  ;;  %v1000_v37 = vadd.f32 %v982_v16, %v972_v15  ;;  %1025 = vst [vmem:[#allocation21 + $0x10] sm:$0xff] %v1017_v23  ;;  %1085 = vmatpush.msrb.mxu0 %v1017_v23  ;;  %1114 = vmatpush.msrb.mxu1 %v1018_v24 }
 0x88d   :  { %1026 = vst [vmem:[#allocation21 + $0x18] sm:$0xff] %v1018_v24 }
 0x88e   :  { %1007 = vst [vmem:[#allocation20] sm:$0xff] %v999_v36  ;;  %v1015_v38 = vmax.f32 %v999_v36, 0.0  ;;  %v1016_v39 = vmax.f32 %v1000_v37, 0.0 }
 0x88f   :  { %1008 = vst [vmem:[#allocation20 + $0x8] sm:$0xff] %v1000_v37  ;;  %v1057_v58 = vpop.permute.xlu0 %1056 }
 0x890   :  { %1023 = vst [vmem:[#allocation21] sm:$0xff] %v1015_v38  ;;  %1086 = vmatpush.msrb.mxu0 %v1015_v38  ;;  %1115 = vmatpush.msrb.mxu1 %v1016_v39  ;;  %1279 = dma.vmem_to_hbm [thread:$0]  %s1272_s13, 1024, %s1274_s1, [#allocation19], %s1852_s4, %s1852_s4, %s1853_s0  }
 0x891   :  { %1024 = vst [vmem:[#allocation21 + $0x8] sm:$0xff] %v1016_v39  ;;  %1390 = vmatmul.msk.f32.vlgmr.msrb.gmra.mxu0 %vm748_vm10, %v1031_v12  ;;  %1394 = vmatmul.msk.f32.vlgmr.msrb.gmra.mxu1 %vm748_vm10, %v1031_v12 }
 0x892   :  { %1292 = dma.vmem_to_hbm [thread:$0]  %s1285_s14, 1024, %s1287_s23, [#allocation22], %s1852_s4, %s1852_s4, %s1853_s0  }
 0x893   :  { %s1245_s23 = sshll.u32 %s1863_s6, 4  ;;  %s1246_s23 = int_to_ptr.vmem [resolvable:$true] %s1245_s23 }
 0x894   :  { %1253 = dma.vmem_to_hbm [thread:$0]  %s1246_s23, 1024, %s1248_s20, [#allocation16], %s1852_s4, %s1852_s4, %s1853_s0   ;;  %v1047_v50 = vpop.permute.xlu1 %1046 }
 0x899   :  { %1391 = vmatmul.msk.f32.gmra.mxu0 %vm748_vm10, %v1032_v27  ;;  %1395 = vmatmul.msk.f32.gmra.mxu1 %vm748_vm10, %v1032_v27 }
 0x8a1   :  { %1392 = vmatmul.msk.f32.gmra.mxu0 %vm748_vm10, %v1033_v14  ;;  %1396 = vmatmul.msk.f32.gmra.mxu1 %vm748_vm10, %v1033_v14 }
 0x8a9   :  { %1393 = vmatmul.msk.f32.gmra.mxu0 %vm748_vm10, %v1034_v40  ;;  %1397 = vmatmul.msk.f32.gmra.mxu1 %vm748_vm10, %v1034_v40 }
 0x90e   :  { %v1088_v44 = vpop.f32.mrf.mxu0  ;;  %v1117_v45 = vpop.f32.mrf.mxu1 }
 0x90f   :  { %v1089_v48 = vadd.f32 %v1088_v44, %v1042_v43  ;;  %v1118_v49 = vadd.f32 %v1117_v45, %v1042_v43 }
 0x911   :  { %1129 = vst [vmem:[#allocation23] sm:$0xff] %v1089_v48 }
 0x912   :  { %1130 = vst [vmem:[#allocation23 + $0x8] sm:$0xff] %v1118_v49 }
 0x916   :  { %v1091_v51 = vpop.f32.mrf.mxu0  ;;  %v1120_v55 = vpop.f32.mrf.mxu1 }
 0x917   :  { %v1092_v52 = vadd.f32 %v1091_v51, %v1047_v50  ;;  %v1121_v53 = vadd.f32 %v1120_v55, %v1047_v50 }
 0x919   :  { %1131 = vst [vmem:[#allocation23 + $0x10] sm:$0xff] %v1092_v52 }
 0x91a   :  { %1132 = vst [vmem:[#allocation23 + $0x18] sm:$0xff] %v1121_v53 }
 0x91e   :  { %v1094_v56 = vpop.f32.mrf.mxu0  ;;  %v1123_v46 = vpop.f32.mrf.mxu1 }
 0x91f   :  { %v1095_v47 = vadd.f32 %v1094_v56, %v1052_v54  ;;  %v1124_v57 = vadd.f32 %v1123_v46, %v1052_v54 }
 0x921   :  { %1133 = vst [vmem:[#allocation23 + $0x20] sm:$0xff] %v1095_v47 }
 0x922   :  { %1134 = vst [vmem:[#allocation23 + $0x28] sm:$0xff] %v1124_v57 }
 0x926   :  { %v1097_v61 = vpop.f32.mrf.mxu0  ;;  %v1126_v4 = vpop.f32.mrf.mxu1 }
 0x927   :  { %v1098_v62 = vadd.f32 %v1097_v61, %v1057_v58  ;;  %v1127_v63 = vadd.f32 %v1126_v4, %v1057_v58 }
 0x929   :  { %1135 = vst [vmem:[#allocation23 + $0x30] sm:$0xff] %v1098_v62 }
 0x92a   :  { %1136 = vst [vmem:[#allocation23 + $0x38] sm:$0xff] %v1127_v63 }
 0x92b   :  { %1305 = dma.vmem_to_hbm [thread:$0]  %s1298_s17, 1024, %s1300_s18, [#allocation22], %s1852_s4, %s1852_s4, %s1853_s0  }
 0x92c   :  { %1820 = dma.done.wait [#allocation4], 512  }
 0x92d   :  { %1821 = vsyncadd [#allocation4], 4294966784 }
 0x92e   :  { %1822 = dma.done.wait [#allocation7], 1024  }
 0x92f   :  { %1823 = vsyncadd [#allocation7], 4294966272 }
 0x930   :  { %1824 = dma.done.wait [#allocation10], 1024  }
 0x931   :  { %1825 = vsyncadd [#allocation10], 4294966272 }
 0x932   :  { %1826 = dma.done.wait [#allocation13], 1536  }
 0x933   :  { %1827 = vsyncadd [#allocation13], 4294965760 }
 0x934   :  { %1828 = dma.done.wait [#allocation16], 2048  }
 0x935   :  { %1829 = vsyncadd [#allocation16], 4294965248 }
 0x936   :  { %1830 = dma.done.wait [#allocation19], 2048  }
 0x937   :  { %1831 = vsyncadd [#allocation19], 4294965248 }
 0x938   :  { %1832 = dma.done.wait [#allocation22], 2048  }
 0x939   :  { %1833 = vsyncadd [#allocation22], 4294965248 }
 0x93a   :  { %1358 = vsyncpa [#allocation3], 1 }
 0x93b   :  { %1359 = vsyncpa [#allocation4], 1 }
 0x93c   :  { %1360 = vsyncpa [#allocation7], 1 }
 0x93d   :  { %1361 = vsyncpa [#allocation10], 1 }
 0x93e   :  { %1362 = vsyncpa [#allocation13], 1 }
 0x93f   :  { %1363 = vsyncpa [#allocation16], 1 }
 0x940   :  { %1364 = vsyncpa [#allocation19], 1 }
 0x941   :  { %1365 = vsyncpa [#allocation22], 1 }

</bundles_post_ra>
